<compile_context>
chip_gen: v7x
topology: tpu7x:2x2x1
jax: 0.10.0
libtpu: 0.0.40
codegen_flags: <defaults>
</compile_context>

<pallas_src>
import functools

import numpy as np
import jax
import jax.numpy as jnp
from jax.experimental import pallas as pl
from jax.experimental.pallas import tpu as pltpu

_LANE = 128                       # output lane width (Q padded to 128, MXU-native)
_MIN_PALLAS_BYTES = 64 * 1024     # below this, a pallas_call is pure launch overhead


# ---------------------------------------------------------------------------
# Trace-time helpers (exact replica of the PyTorch-side numpy code)
# ---------------------------------------------------------------------------
def get_points_hw(r_hw, center, n_points):
    points = []
    step = 6.28318 / n_points          # keep constant verbatim
    for i in range(n_points):
        p = [center[0] - np.cos(i * step) * r_hw[0],
             center[1] - np.sin(i * step) * r_hw[1]]
        points.append(np.round(p).astype(int).tolist())
    return points


def _level_indices(H, W, num_pix):
    """Flattened pixel indices: center first, then the ellipse points."""
    pts = (get_points_hw((H // 4, W // 4), (H // 2, W // 2), num_pix)
           if num_pix else [])
    return [(H // 2) * W + (W // 2)] + [h * W + w for h, w in pts]


def _round_up(x, m):
    return (x + m - 1) // m * m


def _choose_level_tiling(M, K, in_bpe):
    """Pick (tm, tk, nbuf_x, big_vmem) for a (M, K) level."""
    vmem_phys = 64 * 2**20                        # v7x-safe default
    try:
        vmem_phys = int(pltpu.get_tpu_info().vmem_capacity_bytes)
    except Exception:
        pass
    big_vmem = vmem_phys >= 100 * 2**20           # v5e / v6e (128 MiB parts)
    nbuf_x = 3 if big_vmem else 2                 # deeper x buffering when VMEM allows

    # ---- row tile: single tile when it fits; on small-VMEM (2-TC, v7x-class)
    #      parts split the rows so the "parallel" axis engages both TensorCores.
    tm_cap = 256
    if (not big_vmem) and M >= 16:
        tm = min(_round_up(pl.cdiv(M, 2), 8), tm_cap)
    else:
        tm = M if M <= tm_cap else tm_cap

    # ---- K tile: largest 128-aligned chunk that fits the VMEM budget, then
    #      balanced so the last (ragged) block wastes < 128 columns.
    budget = (96 if big_vmem else 44) * 2**20
    fixed = 2 * tm * _LANE * in_bpe + tm * _LANE * 4 + 2 * 8 * _LANE * 4
    per_col = (nbuf_x + 1) * tm * in_bpe + _LANE * (12 + in_bpe)
    tk_cap = max(_LANE, min(8192, ((budget - fixed) // per_col) // _LANE * _LANE))
    if K <= _LANE:
        tk = K                                    # one full block (== array dim)
    else:
        k_chunks = pl.cdiv(K, _LANE)
        num_k = pl.cdiv(k_chunks, tk_cap // _LANE)
        tk = _LANE * pl.cdiv(k_chunks, num_k)
    return tm, tk, nbuf_x, big_vmem


def _x_block_spec(tm, tk, nbuf):
    idx_map = lambda i, k: (i, k)
    if nbuf > 2 and hasattr(pl, "Buffered"):
        try:
            return pl.BlockSpec((tm, tk), idx_map, pipeline_mode=pl.Buffered(nbuf))
        except TypeError:                        # older BlockSpec signature
            pass
    return pl.BlockSpec((tm, tk), idx_map)


# ---------------------------------------------------------------------------
# Kernel: K-tiled selection matmul; selection tile generated in-kernel.
#   tbl_ref : (2, 128) int32, row 0 = gather flat-indices (-1 sentinel),
#             row 1 = 1 in the mean column, 0 elsewhere.
#   x_ref   : (tm, tk) input tile.
#   o_ref   : (tm, 128) output tile (lane-dense).
#   acc_ref : (tm, 128) f32 accumulator scratch.
# ---------------------------------------------------------------------------
def _sel_matmul_kernel(tbl_ref, x_ref, o_ref, acc_ref, *, K, tk, inv_k, ragged_k):
    k_blk = pl.program_id(1)

    @pl.when(k_blk == 0)
    def _():
        acc_ref[...] = jnp.zeros_like(acc_ref)

    x = x_ref[...]
    tbl = tbl_ref[...]
    k_start = k_blk * tk

    if ragged_k:
        # Last K block is partial: zero the out-of-range tail.  Pallas padding
        # values are unspecified and NaN * 0 would poison every output column.
        kk = k_start + jax.lax.broadcasted_iota(jnp.int32, x.shape, 1)
        x = jnp.where(kk < K, x, 0)

    # Build the (tk, 128) selection tile on the fly (VPU work hidden under the
    # x DMA): one-hot gather columns + an all-ones column for the spatial sum.
    rows = k_start + jax.lax.broadcasted_iota(jnp.int32, (tk, _LANE), 0)
    onehot = jnp.where(rows == tbl[0:1, :], 1.0, 0.0)          # f32 0/1, exact
    s = (onehot + tbl[1:2, :].astype(jnp.float32)).astype(x.dtype)

    acc_ref[...] += jnp.dot(x, s, preferred_element_type=jnp.float32)

    @pl.when(k_blk == pl.num_programs(1) - 1)
    def _():
        # The ones-column accumulated a spatial *sum* in f32; apply the exact
        # 1/(H*W) scale only here so the mean stays exact even for bf16 inputs.
        scale = jnp.where(tbl[1:2, :] == 1, jnp.float32(inv_k), jnp.float32(1.0))
        o_ref[...] = (acc_ref[...] * scale).astype(o_ref.dtype)


def _extract_level_pallas(src, flat_idx, Q):
    B, C, H, W = src.shape
    M, K = B * C, H * W
    dtype = src.dtype
    in_bpe = np.dtype(dtype).itemsize

    tm, tk, nbuf_x, big_vmem = _choose_level_tiling(M, K, in_bpe)
    grid_m = pl.cdiv(M, tm)
    grid_k = pl.cdiv(K, tk)
    ragged_k = (K % tk) != 0

    # Tiny index table (the only extra HBM traffic besides the feature map):
    #   row 0: flat pixel index per output column (-1 = no gather)
    #   row 1: 1 in the mean column (column 1), 0 elsewhere
    tbl = np.full((2, _LANE), -1, dtype=np.int32)
    tbl[1, :] = 0
    tbl[0, 0] = flat_idx[0]                      # center pixel
    tbl[1, 1] = 1                                # spatial-mean column
    for j, fi in enumerate(flat_idx[1:]):        # ellipse points
        tbl[0, 2 + j] = fi
    tbl = jnp.asarray(tbl)

    flat = src.reshape(M, K)                     # no jnp.pad: ragged edges masked in-kernel

    kernel = functools.partial(_sel_matmul_kernel, K=K, tk=tk,
                               inv_k=1.0 / K, ragged_k=ragged_k)

    cost = pl.CostEstimate(
        flops=2 * M * grid_k * tk * _LANE,
        transcendentals=0,
        bytes_accessed=M * K * in_bpe + 2 * _LANE * 4 + M * _LANE * in_bpe)

    # Rough VMEM footprint: x multi-buffer + masked-x/iota temps + in-kernel
    # selection-tile temporaries + out double-buffer + f32 accumulator.
    vmem_need = (nbuf_x * tm * tk * in_bpe
                 + tm * tk * in_bpe
                 + tk * _LANE * (12 + in_bpe)
                 + 2 * tm * _LANE * in_bpe
                 + tm * _LANE * 4
                 + 2 * 8 * _LANE * 4)
    vmem_cap = (112 if big_vmem else 56) * 2**20   # leave runtime headroom
    vmem_limit = int(min(vmem_cap, max(32 * 2**20, vmem_need + (8 << 20))))

    out = pl.pallas_call(
        kernel,
        out_shape=jax.ShapeDtypeStruct((M, _LANE), dtype),
        grid_spec=pltpu.PrefetchScalarGridSpec(
            num_scalar_prefetch=0,
            grid=(grid_m, grid_k),
            in_specs=[pl.BlockSpec((2, _LANE), lambda i, k: (0, 0)),   # resident table
                      _x_block_spec(tm, tk, nbuf_x)],
            out_specs=pl.BlockSpec((tm, _LANE), lambda i, k: (i, 0)),
            scratch_shapes=[pltpu.VMEM((tm, _LANE), jnp.float32)]),
        compiler_params=pltpu.CompilerParams(
            dimension_semantics=("parallel", "arbitrary"),
            vmem_limit_bytes=vmem_limit),
        cost_estimate=cost,
    )(tbl, flat)

    return out[:, :Q].reshape(B, C, Q)


def _extract_level_xla(src, num_pix):
    """Tiny levels: plain XLA (a pallas_call here is pure launch overhead)."""
    _, _, H, W = src.shape
    cols = [src[:, :, H // 2, W // 2], src.mean(axis=(2, 3))]
    if num_pix:
        for h, w in get_points_hw((H // 4, W // 4), (H // 2, W // 2), num_pix):
            cols.append(src[:, :, h, w])
    return jnp.stack(cols, axis=2)


def pixel_extractor(esrcs):
    """esrcs: list of (B, C, H, W) arrays.  Returns list of (B, C, Q_lvl)."""
    n_lvls = len(esrcs)
    outs = []
    # TODO(synk): fuse all gate-passing levels into a single pallas_call (one K
    # grid spanning levels + per-level column offsets in the index table) to
    # amortize launch / pipeline drain-refill across the pyramid.
    for lvl, src in enumerate(esrcs):
        B, C, H, W = src.shape
        num_pix = 2 * (n_lvls - lvl - 1)
        Q = 2 + num_pix
        level_bytes = B * C * H * W * np.dtype(src.dtype).itemsize
        if Q <= _LANE and level_bytes >= _MIN_PALLAS_BYTES:
            outs.append(_extract_level_pallas(src, _level_indices(H, W, num_pix), Q))
        else:
            outs.append(_extract_level_xla(src, num_pix))
    return outs


def pixel_extractor_ref(esrcs):
    """Pure-JAX reference mirroring the PyTorch forward exactly."""
    n_lvls = len(esrcs)
    outs = []
    for lvl, src in enumerate(esrcs):
        _, _, H, W = src.shape
        q = [src[:, :, H // 2, W // 2], src.mean(axis=(2, 3))]
        num_pix = 2 * (n_lvls - lvl - 1)
        if num_pix:
            for h, w in get_points_hw((H // 4, W // 4), (H // 2, W // 2), num_pix):
                q.append(src[:, :, h, w])
        outs.append(jnp.stack(q, axis=2))
    return outs


if __name__ == "__main__":
    key = jax.random.PRNGKey(0)
    B, C = 2, 64
    # 4-level feature pyramid, NCHW, like a small FPN.  The 20x20 level
    # exercises the ragged-K (non-128-multiple) path; the 8x8 level takes the
    # plain-XLA fallback (below the byte gate).
    shapes = [(B, C, 32, 32), (B, C, 20, 20), (B, C, 16, 16), (B, C, 8, 8)]
    keys = jax.random.split(key, len(shapes))
    esrcs = [jax.random.normal(k, s, dtype=jnp.float32)
             for k, s in zip(keys, shapes)]

    outs = pixel_extractor(esrcs)
    outs = [jax.block_until_ready(o) for o in outs]

    refs = pixel_extractor_ref(esrcs)
    for o, r in zip(outs, refs):
        assert o.shape == r.shape, (o.shape, r.shape)
        np.testing.assert_allclose(np.asarray(o), np.asarray(r),
                                   rtol=1e-5, atol=1e-5)

    print("KERNEL_OK")
</pallas_src>

<mosaic_0001>
module attributes {stable_mosaic.version = 11 : i64} {
  func.func @_sel_matmul_kernel(%arg0: i32, %arg1: i32, %arg2: memref<2x128xi32, #tpu.memory_space<vmem>>, %arg3: memref<64x1024xf32, #tpu.memory_space<vmem>>, %arg4: memref<64x128xf32, #tpu.memory_space<vmem>>, %arg5: memref<64x128xf32, #tpu.memory_space<vmem>>) attributes {dimension_semantics = [#tpu.dimension_semantics<parallel>, #tpu.dimension_semantics<arbitrary>], iteration_bounds = array<i64: 2, 1>, scalar_prefetch = 0 : i64, scratch_operands = 1 : i64, tpu.core_type = #tpu.core_type<tc>, window_params = [{pipeline_mode = #tpu.pipeline_mode<synchronous>, transform_indices = @transform_0, window_bounds = array<i64: 2, 128>}, {transform_indices = @transform_1, window_bounds = array<i64: 64, 1024>}, {transform_indices = @transform_2, window_bounds = array<i64: 64, 128>}]} {
    %c0_i32 = arith.constant 0 : i32
    %0 = arith.cmpi eq, %arg1, %c0_i32 : i32
    %1 = arith.extui %0 : i1 to i32
    %c0_i32_0 = arith.constant 0 : i32
    %2 = arith.cmpi ne, %1, %c0_i32_0 : i32
    scf.if %2 {
      %cst_12 = arith.constant 0.000000e+00 : f32
      %26 = vector.broadcast %cst_12 : f32 to vector<64x128xf32>
      %c0_13 = arith.constant 0 : index
      %c0_14 = arith.constant 0 : index
      %27 = vector.load %arg5[%c0_13, %c0_14] : memref<64x128xf32, #tpu.memory_space<vmem>>, vector<64x128xf32>
      tpu.vector_store %arg5[%c0_13, %c0_14], %26 {strides = array<i32>} : memref<64x128xf32, #tpu.memory_space<vmem>>, vector<64x128xf32>,
    } else {
    }
    %c0 = arith.constant 0 : index
    %c0_1 = arith.constant 0 : index
    %3 = vector.load %arg3[%c0, %c0_1] : memref<64x1024xf32, #tpu.memory_space<vmem>>, vector<64x1024xf32>
    %c0_2 = arith.constant 0 : index
    %c0_3 = arith.constant 0 : index
    %4 = vector.load %arg2[%c0_2, %c0_3] : memref<2x128xi32, #tpu.memory_space<vmem>>, vector<2x128xi32>
    %c1024_i32 = arith.constant 1024 : i32
    %5 = arith.muli %arg1, %c1024_i32 : i32
    %6 = tpu.iota {dimensions = array<i32: 0>} : vector<1024x128xi32>
    %7 = vector.broadcast %5 : i32 to vector<1024x128xi32>
    %8 = arith.addi %7, %6 : vector<1024x128xi32>
    %9 = vector.extract_strided_slice %4 {offsets = [0, 0], sizes = [1, 128], strides = [1, 1]} : vector<2x128xi32> to vector<1x128xi32>
    %10 = vector.broadcast %9 : vector<1x128xi32> to vector<1024x128xi32>
    %11 = arith.cmpi eq, %8, %10 : vector<1024x128xi32>
    %cst = arith.constant 1.000000e+00 : f32
    %cst_4 = arith.constant 0.000000e+00 : f32
    %12 = vector.broadcast %cst : f32 to vector<1024x128xf32>
    %13 = vector.broadcast %cst_4 : f32 to vector<1024x128xf32>
    %14 = arith.select %11, %12, %13 : vector<1024x128xi1>, vector<1024x128xf32>
    %15 = vector.extract_strided_slice %4 {offsets = [1, 0], sizes = [1, 128], strides = [1, 1]} : vector<2x128xi32> to vector<1x128xi32>
    %16 = arith.sitofp %15 : vector<1x128xi32> to vector<1x128xf32>
    %17 = vector.broadcast %16 : vector<1x128xf32> to vector<1024x128xf32>
    %18 = arith.addf %14, %17 : vector<1024x128xf32>
    %c0_5 = arith.constant 0 : index
    %c0_6 = arith.constant 0 : index
    %19 = vector.load %arg5[%c0_5, %c0_6] : memref<64x128xf32, #tpu.memory_space<vmem>>, vector<64x128xf32>
    %cst_7 = arith.constant dense<0.000000e+00> : vector<64x128xf32>
    %20 = tpu.matmul %3, %18, %cst_7 {dimension_numbers = #tpu.dot_dimension_numbers<[1], [0], [0], [1], [0, 0, 1, 1], [], []>} : vector<64x1024xf32>, vector<1024x128xf32>, vector<64x128xf32> -> vector<64x128xf32>
    %21 = arith.addf %19, %20 : vector<64x128xf32>
    %c0_8 = arith.constant 0 : index
    %c0_9 = arith.constant 0 : index
    %22 = vector.load %arg5[%c0_8, %c0_9] : memref<64x128xf32, #tpu.memory_space<vmem>>, vector<64x128xf32>
    tpu.vector_store %arg5[%c0_8, %c0_9], %21 {strides = array<i32>} : memref<64x128xf32, #tpu.memory_space<vmem>>, vector<64x128xf32>,
    %c0_i32_10 = arith.constant 0 : i32
    %23 = arith.cmpi eq, %arg1, %c0_i32_10 : i32
    %24 = arith.extui %23 : i1 to i32
    %c0_i32_11 = arith.constant 0 : i32
    %25 = arith.cmpi ne, %24, %c0_i32_11 : i32
    scf.if %25 {
      %26 = vector.extract_strided_slice %4 {offsets = [1, 0], sizes = [1, 128], strides = [1, 1]} : vector<2x128xi32> to vector<1x128xi32>
      %c1_i32 = arith.constant 1 : i32
      %27 = vector.broadcast %c1_i32 : i32 to vector<1x128xi32>
      %28 = arith.cmpi eq, %26, %27 : vector<1x128xi32>
      %cst_12 = arith.constant 9.765625E-4 : f32
      %cst_13 = arith.constant 1.000000e+00 : f32
      %29 = vector.broadcast %cst_12 : f32 to vector<1x128xf32>
      %30 = vector.broadcast %cst_13 : f32 to vector<1x128xf32>
      %31 = arith.select %28, %29, %30 : vector<1x128xi1>, vector<1x128xf32>
      %c0_14 = arith.constant 0 : index
      %c0_15 = arith.constant 0 : index
      %32 = vector.load %arg5[%c0_14, %c0_15] : memref<64x128xf32, #tpu.memory_space<vmem>>, vector<64x128xf32>
      %33 = vector.broadcast %31 : vector<1x128xf32> to vector<64x128xf32>
      %34 = arith.mulf %32, %33 : vector<64x128xf32>
      %c0_16 = arith.constant 0 : index
      %c0_17 = arith.constant 0 : index
      %35 = vector.load %arg4[%c0_16, %c0_17] : memref<64x128xf32, #tpu.memory_space<vmem>>, vector<64x128xf32>
      tpu.vector_store %arg4[%c0_16, %c0_17], %34 {strides = array<i32>} : memref<64x128xf32, #tpu.memory_space<vmem>>, vector<64x128xf32>,
    } else {
    }
    return
  }
  func.func @transform_0(%arg0: i32, %arg1: i32) -> (i32, i32) {
    %c0_i32 = arith.constant 0 : i32
    %c0_i32_0 = arith.constant 0 : i32
    %c0_i32_1 = arith.constant 0 : i32
    return %c0_i32, %c0_i32_0 : i32, i32
  }
  func.func @transform_1(%arg0: i32, %arg1: i32) -> (i32, i32) {
    %c0_i32 = arith.constant 0 : i32
    return %arg0, %arg1 : i32, i32
  }
  func.func @transform_2(%arg0: i32, %arg1: i32) -> (i32, i32) {
    %c0_i32 = arith.constant 0 : i32
    %c0_i32_0 = arith.constant 0 : i32
    return %arg0, %c0_i32 : i32, i32
  }
}

</mosaic_0001>

<bundles_post_ra>
// kernel: tpu_custom_call.1
= control target key start
LH: loop header
LB: loop body
LE: loop exit
PB: predicated region body
PF: predicated region fallthrough
CT: control target
= control target key end

     0   :  { %7 = vsyncpa [#allocation4], 0  ;;  %s3012_s0 = inlined_call_operand.hbm [shape: s32[2,128], index: 0, kind: input, shape index: {}]   ;;  %s3013_s1 = inlined_call_operand.hbm [shape: f32[128,1024], index: 1, kind: input, shape index: {}]   ;;  %s3014_s2 = inlined_call_operand.hbm [shape: f32[128,128], index: 2, kind: output, shape index: {}]  }
   0x1   :  { %8 = vsyncpa [#allocation7], 0 }
   0x2   :  { %10 = vsyncpa [#allocation7 + $0x1], 0 }
   0x3   :  { %11 = vsyncpa [#allocation5], 0 }
   0x4   :  { %13 = vsyncpa [#allocation5 + $0x1], 0  ;;  %s2134_s9 = smov 0   ;;  %s2136_s10 = smov 0  }
   0x5   :  { %s2138_s11 = smov 0   ;;  %s2140_s12 = smov 0  }
   0x6   :  { %s2142_s13 = smov 0   ;;  %s2144_s14 = smov 0  }
   0x7 LB: > { %s1511_s15 = sadd.s32 4294967295, %s2108_s14   ;;  %s1512_s16 = sadd.s32 4294967294, %s2108_s14   ;;  %s2108_s14 = sphi %s2144_s14, %s19_s14   ;;  %s2104_s13 = sphi %s2142_s13, %s3042_s13   ;;  %s2100_s12 = sphi %s2140_s12, %s3041_s12   ;;  %s2096_s11 = sphi %s2138_s11, %s3040_s11   ;;  %s2092_s10 = sphi %s2136_s10, %s3039_s10   ;;  %s2088_s9 = sphi %s2134_s9, %s3038_s9  }
   0x8   : > { %s61_s17 = sadd.s32 1, %s2096_s11  ;;  %p68_p0 = scmp.ne.s32.totalorder %s2096_s11, %s2092_s10 }
   0x9   : > { %p69_p1 = scmp.eq.s32.totalorder %s2108_s14, 0  ;;  %p74_p2 = scmp.ne.s32.totalorder %s2092_s10, %s2088_s9 }
   0xa   : > { %p2172_p3 = scmp.eq.s32.totalorder %s1511_s15, 0  ;;  %p98_p4 = scmp.eq.s32.totalorder %s1511_s15, 1 }
   0xb   : > { %p2176_p5 = por %p69_p1, %p68_p0  ;;  %p104_p6 = scmp.eq.s32.totalorder %s1512_s16, 1 }
   0xc   : > { %s3021_s18 = scalar_select %p2172_p3, 1, 0 }
   0xd   : > { %p2182_p7 = por %p2172_p3, %p74_p2  ;;  %p2186_p8 = por %p98_p4, %p68_p0 }
   0xe   : > { %p2190_p9 = por %p104_p6, %p74_p2  ;;  %p1513_p10 = scmp.ge.s32.totalorder %s2108_s14, 1 }
   0xf   : > { %s3023_s20 = scalar_select %p2182_p7, 1, 0 }
  0x10   : > { %s3024_s21 = scalar_select %p2186_p8, 1, 0 }
  0x11   : > { %s3025_s22 = scalar_select %p2190_p9, 1, 0 }
  0x12   : > { %p111_p11 = scmp.lt.s32.totalorder %s2108_s14, 3  ;;  %s2110_s24 = smov [#allocation3]  }
  0x13   : > { %s124_s25 = sshll.u32 %s2110_s24, 4  ;;  %p1905_p1 = scmp.lt.s32.totalorder %s2108_s14, 2  ;;  %s125_s25 = int_to_ptr.vmem [resolvable:$true] %s124_s25 }
  0x14   : > { %p2197_p13 = pnand %p1513_p10, %p111_p11  ;;  %s31_s28 = sadd.s32 1, %s2104_s13 }
  0x15   : > { %p2206_p4 = pnand %p1905_p1, %p2176_p5  ;;  %p2217_p6 = scmp.ge.s32.totalorder %s31_s28, 2 }
  0x16   : > { %s3026_s23 = scalar_select %p2197_p13, 1, 0 }
  0x17   : > { %p1892_p0 = pneg %p2197_p13  ;;  %s135_s30 = sand.u32 1, %s2096_s11  }
  0x18   : > { %s3027_s26 = scalar_select %p2206_p4, 1, 0 }
  0x19   : > { %p2212_p2 = pnand %p1892_p0, %p2172_p3  ;;  %s1964_s5 = scalar_lea.hbm %s3012_s0, 32 }
  0x1a   : > { %s3029_s29 = scalar_select %p2217_p6, 1, 0 }
  0x1b   : > { %p1965_p5 = scmp.ne.s32.totalorder %s3012_s0, %s1964_s5  ;;  %p1966_p10 = pneg %p2212_p2 }
  0x1c   : > { %p1971_p0 = scmp.lt.u32.totalorder %s1964_s5, %s3012_s0 }
  0x1d   : > { %p1967_p11 = pnand %p1966_p10, %p1965_p5 }
  0x1f   : > { %p1968_p1 = pneg %p1967_p11 }
  0x21   : > { %p1973_p12 = pnand %p1971_p0, %p1968_p1 }
  0x23   : > { %1976 = shalt.err (!%p1973_p12)
}
  0x24   : > { %s1977_s16 = scalar_lea.vmem %s125_s25, 32  ;;  %p1985_p3 = scmp.lt.s32.totalorder %s125_s25, %s125_s25 }
  0x25   : > { %p1978_p9 = scmp.ne.s32.totalorder %s125_s25, %s1977_s16  ;;  %p1986_p13 = scmp.lt.s32.totalorder %s1977_s16, %s1977_s16 }
  0x27   : > { %p1980_p8 = pnand %p1978_p9, %p1966_p10  ;;  %p1987_p4 = por %p1986_p13, %p1985_p3 }
  0x29   : > { %p1981_p7 = pneg %p1980_p8 }
  0x2b   : > { %p1988_p6 = pnand %p1987_p4, %p1981_p7 }
  0x2d   : > { %1991 = shalt.err (!%p1988_p6)
}
  0x2e   : > { %1895 = dma.hbm_to_vmem [thread:$0]  (!%p2212_p2), %s3012_s0, 32, %s125_s25, [#allocation4]  }
  0x2f   : > { %p3030_p9 = scmp.ne.s32.totalorder %s3029_s29, 0  ;;  %s1516_s3 = sshll.u32 %s135_s30, 9 }
  0x30   : > { %s1530_s5 = sshll.u32 %s2104_s13, 13  ;;  %s139_s8 = scalar_lea.vmem [#allocation6], %s1516_s3 }
  0x31   : > { %s3044_s28 = smov (%p3030_p9, %s31_s28), 0  ;;  %s2248_s7 = scalar_lea.hbm %s3013_s1, %s1530_s5 }
  0x32   : > { %s56_s4 = ssub.s32 %s2104_s13, %s3044_s28  ;;  %s149_s15 = sshll.u32 %s139_s8, 4  ;;  %s2255_s15 = int_to_ptr.vmem [resolvable:$true] %s149_s15 }
  0x33   : > { %p59_p3 = scmp.eq.s32.totalorder %s56_s4, 0  ;;  %s2257_s29 = scalar_lea.sflag [#allocation7], %s135_s30 }
  0x34   : > { %s1992_s16 = scalar_lea.hbm %s2248_s7, 8192  ;;  %p3031_p8 = scmp.ne.s32.totalorder %s3027_s26, 0 }
  0x35   : > { %s2253_s25 = scalar_select %p59_p3, %s2096_s11, %s61_s17  }
  0x36   : > { %p1993_p7 = scmp.ne.s32.totalorder %s2248_s7, %s1992_s16  ;;  %p1994_p12 = pneg %p3031_p8 }
  0x37   : > { %s1997_s3 = scalar_lea.hbm %s3013_s1, 16384  ;;  %p1998_p2 = scmp.lt.u32.totalorder %s2248_s7, %s3013_s1 }
  0x38   : > { %p1995_p13 = pnand %p1994_p12, %p1993_p7  ;;  %p1999_p6 = scmp.lt.u32.totalorder %s1997_s3, %s1992_s16 }
  0x39   : > { %p2001_p10 = scmp.lt.u32.totalorder %s1992_s16, %s2248_s7 }
  0x3a   : > { %p1996_p4 = pneg %p1995_p13  ;;  %p2000_p5 = por %p1999_p6, %p1998_p2 }
  0x3c   : > { %p2002_p11 = por %p2001_p10, %p2000_p5 }
  0x3e   : > { %p2003_p1 = pnand %p2002_p11, %p1996_p4 }
  0x40   : > { %2006 = shalt.err (!%p2003_p1)
}
  0x41   : > { %s2007_s17 = scalar_lea.vmem %s2255_s15, 8192  ;;  %s2111_s30 = smov [#allocation6]  }
  0x42   : > { %p2008_p0 = scmp.ne.s32.totalorder %s2255_s15, %s2007_s17  ;;  %s2012_s27 = sshll.u32 %s2111_s30, 4  ;;  %s2013_s27 = int_to_ptr.vmem [resolvable:$false] %s2012_s27 }
  0x43   : > { %s2014_s6 = scalar_lea.vmem %s2013_s27, 16384  ;;  %p2015_p7 = scmp.lt.s32.totalorder %s2255_s15, %s2013_s27 }
  0x44   : > { %p2010_p9 = pnand %p2008_p0, %p1994_p12  ;;  %p2016_p13 = scmp.lt.s32.totalorder %s2014_s6, %s2007_s17 }
  0x46   : > { %p2011_p3 = pneg %p2010_p9  ;;  %p2017_p2 = por %p2016_p13, %p2015_p7 }
  0x48   : > { %p2018_p6 = pnand %p2017_p2, %p2011_p3 }
  0x4a   : > { %2021 = shalt.err (!%p2018_p6)
}
  0x4b   : > { %s2112_s8 = smov 1024   ;;  %s2113_s16 = smov 64  }
  0x4c   : > { %1899 = dma.hbm_to_vmem [thread:$0]  (!%p3031_p8), %s2248_s7, 8192, %s2255_s15, %s2257_s29, %s2112_s8, %s2112_s8, %s2113_s16  }
  0x4d   : > { %p3032_p12 = scmp.ne.s32.totalorder %s3026_s23, 0 }
  0x4e   : > { %p3033_p4 = scmp.ne.s32.totalorder (!%p3032_p12), %s3021_s18, 0 }
  0x4f   : > { %161 = sbr.rel (%p3032_p12) target bundleno = 508 (0x1fc), region = 28 }
  0x56   : > { %2075 = dma.done.wait (%p3033_p4), [#allocation4], 32  }
  0x57   : > { %2077 = vsyncadd (%p3033_p4), [#allocation4], 4294967264  ;;  %s2292_s19 = sand.u32 1, %s2092_s10   ;;  %p3034_p8 = scmp.ne.s32.totalorder %s3023_s20, 0 }
  0x58   : > { %s1522_s24 = sshll.u32 %s2292_s19, 9  ;;  %s168_s3 = scalar_lea.sflag [#allocation7], %s2292_s19 }
  0x59   : > { %s2296_s4 = scalar_lea.vmem [#allocation6], %s1522_s24 }
  0x5a   : > { %2079 = dma.done.wait (%p3034_p8), %s168_s3, 8192  }
  0x5b   : > { %2081 = vsyncadd (%p3034_p8), %s168_s3, 4294959104  ;;  %v273_v0 = vlaneseq  ;;  %v271_v14 = vld [vmem:[#allocation3] sm:$0x3]  ;;  %v208_v23 = vld [vmem:[%s2296_s4 + $0x8] sm:$0xff]  ;;  %v2114_v30 = vmov 0.0   ;;  %s1523_s18 = sshll.u32 %s2292_s19, 6 }
  0x5c   : > { %v791_v20 = vcvt.s32.f32 %v271_v14  ;;  %v210_v24 = vld [vmem:[%s2296_s4 + $0x18] sm:$0xff]  ;;  %996 = vmatprep.mubr.f32.mxu0 %v208_v23  ;;  %s2933_s20 = scalar_lea.vmem [#allocation8], %s1523_s18  ;;  %s1531_s23 = sshll.u32 %s2100_s12, 10 }
  0x5d   : > { %v2302_v1 = vshrl.u32 %v273_v0, 7  ;;  %1101 = vmatprep.mubr.f32.mxu1 %v210_v24  ;;  %s1415_s26 = sshll.u32 %s2933_s20, 4  ;;  %s2959_s29 = scalar_lea.hbm %s3014_s2, %s1531_s23  ;;  %s2961_s26 = int_to_ptr.vmem [resolvable:$true] %s1415_s26 }
  0x5e   : > { %s1402_s5 = scalar_lea.sflag [#allocation5], %s2292_s19  ;;  %s2022_s17 = scalar_lea.vmem %s2961_s26, 1024 }
  0x5f   : > { %v290_v2 = vadd.s32 128, %v2302_v1  ;;  %v291_v3 = vadd.s32 136, %v2302_v1  ;;  %v533_v4 = vsub.s32 0, %v2302_v1  ;;  %v794_v5 = vsub.s32 1, %v2302_v1  ;;  %p2023_p5 = scmp.ne.s32.totalorder %s2961_s26, %s2022_s17  ;;  %p3035_p10 = scmp.ne.s32.totalorder %s3024_s21, 0 }
  0x60   : > { %v322_v6 = vadd.s32 384, %v2302_v1  ;;  %v323_v7 = vadd.s32 392, %v2302_v1  ;;  %v275_v8 = vadd.s32 8, %v2302_v1  ;;  %v306_v9 = vadd.s32 256, %v2302_v1  ;;  %s2116_s12 = smov [#allocation8]  }
  0x61   : > { %v307_v10 = vadd.s32 264, %v2302_v1  ;;  %v292_v11 = vadd.s32 144, %v2302_v1  ;;  %v293_v12 = vadd.s32 152, %v2302_v1  ;;  %v324_v13 = vadd.s32 400, %v2302_v1  ;;  %p2024_p11 = pnand %p2023_p5, %p3035_p10  ;;  %s2026_s30 = sshll.u32 %s2116_s12, 4  ;;  %s2027_s30 = int_to_ptr.vmem [resolvable:$false] %s2026_s30 }
  0x62   : > { %v325_v15 = vadd.s32 408, %v2302_v1  ;;  %v2318_v16 = vadd.s32 16, %v2302_v1  ;;  %v2321_v17 = vadd.s32 24, %v2302_v1  ;;  %v2324_v18 = vadd.s32 272, %v2302_v1  ;;  %s2028_s27 = scalar_lea.vmem %s2027_s30, 2048  ;;  %p2029_p0 = scmp.lt.s32.totalorder %s2961_s26, %s2027_s30 }
  0x63   : > { %v2326_v19 = vrot.slane %v271_v14, %v533_v4  ;;  %v2329_v21 = vadd.s32 280, %v2302_v1  ;;  %v2332_v22 = vadd.s32 160, %v2302_v1  ;;  %v2337_v25 = vadd.s32 168, %v2302_v1  ;;  %p2025_p1 = pneg %p2024_p11  ;;  %p2030_p9 = scmp.lt.s32.totalorder %s2028_s27, %s2022_s17 }
  0x64   : > { %v2340_v26 = vadd.s32 416, %v2302_v1  ;;  %v2343_v27 = vadd.s32 424, %v2302_v1  ;;  %v2346_v28 = vadd.s32 32, %v2302_v1  ;;  %v2352_v29 = vrot.slane %v791_v20, %v794_v5 }
  0x65   : > { %vm551_vm0 = vcmp.eq.s32.totalorder %v290_v2, %v2326_v19  ;;  %vm552_vm1 = vcmp.eq.s32.totalorder %v291_v3, %v2326_v19  ;;  %vm583_vm2 = vcmp.eq.s32.totalorder %v322_v6, %v2326_v19  ;;  %vm584_vm3 = vcmp.eq.s32.totalorder %v323_v7, %v2326_v19  ;;  %p2031_p3 = por %p2030_p9, %p2029_p0 }
  0x66   : > { %v679_v31 = vsel %vm551_vm0, 1.0, %v2114_v30  ;;  %v680_v32 = vsel %vm552_vm1, 1.0, %v2114_v30  ;;  %v711_v33 = vsel %vm583_vm2, 1.0, %v2114_v30  ;;  %v712_v36 = vsel %vm584_vm3, 1.0, %v2114_v30 }
  0x67   : > { %v812_v34 = vadd.f32 %v2352_v29, %v679_v31  ;;  %v813_v35 = vadd.f32 %v2352_v29, %v680_v32  ;;  %v844_v37 = vadd.f32 %v2352_v29, %v711_v33  ;;  %v845_v38 = vadd.f32 %v2352_v29, %v712_v36  ;;  %p2032_p7 = pnand %p2031_p3, %p2025_p1 }
  0x68   : > { %vm535_vm4 = vcmp.eq.s32.totalorder %v2302_v1, %v2326_v19  ;;  %vm536_vm5 = vcmp.eq.s32.totalorder %v275_v8, %v2326_v19  ;;  %vm567_vm6 = vcmp.eq.s32.totalorder %v306_v9, %v2326_v19  ;;  %vm568_vm7 = vcmp.eq.s32.totalorder %v307_v10, %v2326_v19 }
  0x69   : > { %v1756_v39 = vpack.c.bf16 %v813_v35, %v812_v34  ;;  %v663_v40 = vsel %vm535_vm4, 1.0, %v2114_v30  ;;  %v664_v41 = vsel %vm536_vm5, 1.0, %v2114_v30  ;;  %v1788_v42 = vpack.c.bf16 %v845_v38, %v844_v37 }
  0x6a   : > { %v796_v43 = vadd.f32 %v2352_v29, %v663_v40  ;;  %v797_v44 = vadd.f32 %v2352_v29, %v664_v41  ;;  %v695_v45 = vsel %vm567_vm6, 1.0, %v2114_v30  ;;  %v696_v46 = vsel %vm568_vm7, 1.0, %v2114_v30 }
  0x6b   : > { %1757 = vmatprep.subr.bf16.mxu0 %v1756_v39  ;;  %v828_v47 = vadd.f32 %v2352_v29, %v695_v45  ;;  %vm553_vm8 = vcmp.eq.s32.totalorder %v292_v11, %v2326_v19  ;;  %vm554_vm9 = vcmp.eq.s32.totalorder %v293_v12, %v2326_v19  ;;  %1789 = vmatprep.subr.bf16.mxu1 %v1788_v42  ;;  %v328_v33 = vadd.s32 432, %v2302_v1 }
  0x6c   : > { %v1758_v48 = vpack.c.bf16 %v797_v44, %v796_v43  ;;  %v829_v49 = vadd.f32 %v2352_v29, %v696_v46  ;;  %v681_v50 = vsel %vm553_vm8, 1.0, %v2114_v30  ;;  %v682_v51 = vsel %vm554_vm9, 1.0, %v2114_v30 }
  0x6d   : > { %v814_v52 = vadd.f32 %v2352_v29, %v681_v50  ;;  %v815_v53 = vadd.f32 %v2352_v29, %v682_v51  ;;  %vm585_vm10 = vcmp.eq.s32.totalorder %v324_v13, %v2326_v19  ;;  %vm586_vm11 = vcmp.eq.s32.totalorder %v325_v15, %v2326_v19 }
  0x6e   : > { %1759 = vmatpush3.bf16.msra.mxu0 %v1758_v48  ;;  %v1790_v54 = vpack.c.bf16 %v829_v49, %v828_v47  ;;  %v713_v55 = vsel %vm585_vm10, 1.0, %v2114_v30  ;;  %v714_v56 = vsel %vm586_vm11, 1.0, %v2114_v30  ;;  %vm537_vm12 = vcmp.eq.s32.totalorder %v2318_v16, %v2326_v19 }
  0x6f   : > { %v1760_v57 = vpack.c.bf16 %v815_v53, %v814_v52  ;;  %v846_v58 = vadd.f32 %v2352_v29, %v713_v55  ;;  %v847_v59 = vadd.f32 %v2352_v29, %v714_v56  ;;  %vm538_vm13 = vcmp.eq.s32.totalorder %v2321_v17, %v2326_v19 }
  0x70   : > { %1791 = vmatpush3.bf16.msra.mxu1 %v1790_v54  ;;  %v665_v60 = vsel %vm537_vm12, 1.0, %v2114_v30  ;;  %v666_v61 = vsel %vm538_vm13, 1.0, %v2114_v30  ;;  %vm569_vm14 = vcmp.eq.s32.totalorder %v2324_v18, %v2326_v19  ;;  %vm570_vm15 = vcmp.eq.s32.totalorder %v2329_v21, %v2326_v19 }
  0x71   : > { %1761 = vmatprep.subr.bf16.mxu0 %v1760_v57  ;;  %v1792_v62 = vpack.c.bf16 %v847_v59, %v846_v58  ;;  %v798_v63 = vadd.f32 %v2352_v29, %v665_v60  ;;  %v799_v0 = vadd.f32 %v2352_v29, %v666_v61  ;;  %v697_v2 = vsel %vm569_vm14, 1.0, %v2114_v30 }
  0x72   : > { %v698_v3 = vsel %vm570_vm15, 1.0, %v2114_v30  ;;  %v830_v4 = vadd.f32 %v2352_v29, %v697_v2  ;;  %vm555_vm0 = vcmp.eq.s32.totalorder %v2332_v22, %v2326_v19  ;;  %vm556_vm1 = vcmp.eq.s32.totalorder %v2337_v25, %v2326_v19 }
  0x73   : > { %1793 = vmatprep.subr.bf16.mxu1 %v1792_v62  ;;  %v1762_v6 = vpack.c.bf16 %v799_v0, %v798_v63  ;;  %v831_v7 = vadd.f32 %v2352_v29, %v698_v3  ;;  %v683_v8 = vsel %vm555_vm0, 1.0, %v2114_v30  ;;  %v684_v9 = vsel %vm556_vm1, 1.0, %v2114_v30 }
  0x74   : > { %v816_v10 = vadd.f32 %v2352_v29, %v683_v8  ;;  %v817_v11 = vadd.f32 %v2352_v29, %v684_v9  ;;  %vm587_vm2 = vcmp.eq.s32.totalorder %v2340_v26, %v2326_v19  ;;  %vm588_vm3 = vcmp.eq.s32.totalorder %v2343_v27, %v2326_v19 }
  0x75   : > { %1763 = vmatpush3.bf16.msra.mxu0 %v1762_v6  ;;  %v1794_v12 = vpack.c.bf16 %v831_v7, %v830_v4  ;;  %v715_v13 = vsel %vm587_vm2, 1.0, %v2114_v30  ;;  %v716_v14 = vsel %vm588_vm3, 1.0, %v2114_v30  ;;  %v279_v15 = vadd.s32 40, %v2302_v1 }
  0x76   : > { %v1764_v16 = vpack.c.bf16 %v817_v11, %v816_v10  ;;  %v848_v17 = vadd.f32 %v2352_v29, %v715_v13  ;;  %v849_v18 = vadd.f32 %v2352_v29, %v716_v14  ;;  %vm539_vm4 = vcmp.eq.s32.totalorder %v2346_v28, %v2326_v19 }
  0x77   : > { %1795 = vmatpush3.bf16.msra.mxu1 %v1794_v12  ;;  %vm540_vm5 = vcmp.eq.s32.totalorder %v279_v15, %v2326_v19  ;;  %v667_v20 = vsel %vm539_vm4, 1.0, %v2114_v30  ;;  %v310_v21 = vadd.s32 288, %v2302_v1  ;;  %v311_v22 = vadd.s32 296, %v2302_v1 }
  0x78   : > { %1765 = vmatprep.subr.bf16.mxu0 %v1764_v16  ;;  %v1796_v23 = vpack.c.bf16 %v849_v18, %v848_v17  ;;  %v668_v24 = vsel %vm540_vm5, 1.0, %v2114_v30  ;;  %v800_v25 = vadd.f32 %v2352_v29, %v667_v20  ;;  %v296_v26 = vadd.s32 176, %v2302_v1 }
  0x79   : > { %v801_v27 = vadd.f32 %v2352_v29, %v668_v24  ;;  %vm571_vm6 = vcmp.eq.s32.totalorder %v310_v21, %v2326_v19  ;;  %vm572_vm7 = vcmp.eq.s32.totalorder %v311_v22, %v2326_v19  ;;  %v297_v28 = vadd.s32 184, %v2302_v1 }
  0x7a   : > { %1797 = vmatprep.subr.bf16.mxu1 %v1796_v23  ;;  %v699_v31 = vsel %vm571_vm6, 1.0, %v2114_v30  ;;  %v700_v32 = vsel %vm572_vm7, 1.0, %v2114_v30  ;;  %vm557_vm8 = vcmp.eq.s32.totalorder %v296_v26, %v2326_v19  ;;  %v329_v39 = vadd.s32 440, %v2302_v1 }
  0x7b   : > { %v1766_v34 = vpack.c.bf16 %v801_v27, %v800_v25  ;;  %v832_v35 = vadd.f32 %v2352_v29, %v699_v31  ;;  %v833_v36 = vadd.f32 %v2352_v29, %v700_v32  ;;  %vm558_vm9 = vcmp.eq.s32.totalorder %v297_v28, %v2326_v19 }
  0x7c   : > { %v685_v37 = vsel %vm557_vm8, 1.0, %v2114_v30  ;;  %v686_v38 = vsel %vm558_vm9, 1.0, %v2114_v30  ;;  %vm589_vm10 = vcmp.eq.s32.totalorder %v328_v33, %v2326_v19  ;;  %vm590_vm11 = vcmp.eq.s32.totalorder %v329_v39, %v2326_v19 }
  0x7d   : > { %1767 = vmatpush3.bf16.msra.mxu0 %v1766_v34  ;;  %v1798_v40 = vpack.c.bf16 %v833_v36, %v832_v35  ;;  %v818_v41 = vadd.f32 %v2352_v29, %v685_v37  ;;  %v819_v42 = vadd.f32 %v2352_v29, %v686_v38  ;;  %v717_v43 = vsel %vm589_vm10, 1.0, %v2114_v30 }
  0x7e   : > { %v850_v44 = vadd.f32 %v2352_v29, %v717_v43  ;;  %v280_v45 = vadd.s32 48, %v2302_v1  ;;  %v281_v46 = vadd.s32 56, %v2302_v1  ;;  %v718_v48 = vsel %vm590_vm11, 1.0, %v2114_v30 }
  0x7f   : > { %1799 = vmatpush3.bf16.msra.mxu1 %v1798_v40  ;;  %v1768_v47 = vpack.c.bf16 %v819_v42, %v818_v41  ;;  %v312_v49 = vadd.s32 304, %v2302_v1  ;;  %v313_v50 = vadd.s32 312, %v2302_v1  ;;  %v851_v51 = vadd.f32 %v2352_v29, %v718_v48 }
  0x80   : > { %vm541_vm12 = vcmp.eq.s32.totalorder %v280_v45, %v2326_v19  ;;  %vm542_vm13 = vcmp.eq.s32.totalorder %v281_v46, %v2326_v19  ;;  %v298_v52 = vadd.s32 192, %v2302_v1  ;;  %v299_v61 = vadd.s32 200, %v2302_v1 }
  0x81   : > { %1769 = vmatprep.subr.bf16.mxu0 %v1768_v47  ;;  %v669_v53 = vsel %vm541_vm12, 1.0, %v2114_v30  ;;  %v670_v54 = vsel %vm542_vm13, 1.0, %v2114_v30  ;;  %vm573_vm14 = vcmp.eq.s32.totalorder %v312_v49, %v2326_v19  ;;  %vm574_vm15 = vcmp.eq.s32.totalorder %v313_v50, %v2326_v19 }
  0x82   : > { %v1800_v55 = vpack.c.bf16 %v851_v51, %v850_v44  ;;  %v802_v56 = vadd.f32 %v2352_v29, %v669_v53  ;;  %v803_v57 = vadd.f32 %v2352_v29, %v670_v54  ;;  %v701_v58 = vsel %vm573_vm14, 1.0, %v2114_v30 }
  0x83   : > { %v702_v59 = vsel %vm574_vm15, 1.0, %v2114_v30  ;;  %v834_v60 = vadd.f32 %v2352_v29, %v701_v58  ;;  %vm559_vm0 = vcmp.eq.s32.totalorder %v298_v52, %v2326_v19  ;;  %v330_v2 = vadd.s32 448, %v2302_v1 }
  0x84   : > { %1801 = vmatprep.subr.bf16.mxu1 %v1800_v55  ;;  %v1770_v62 = vpack.c.bf16 %v803_v57, %v802_v56  ;;  %v835_v63 = vadd.f32 %v2352_v29, %v702_v59  ;;  %v687_v0 = vsel %vm559_vm0, 1.0, %v2114_v30  ;;  %vm560_vm1 = vcmp.eq.s32.totalorder %v299_v61, %v2326_v19 }
  0x85   : > { %v820_v3 = vadd.f32 %v2352_v29, %v687_v0  ;;  %v331_v4 = vadd.s32 456, %v2302_v1  ;;  %v282_v6 = vadd.s32 64, %v2302_v1  ;;  %v688_v8 = vsel %vm560_vm1, 1.0, %v2114_v30 }
  0x86   : > { %1771 = vmatpush3.bf16.msra.mxu0 %v1770_v62  ;;  %v1802_v7 = vpack.c.bf16 %v835_v63, %v834_v60  ;;  %vm591_vm2 = vcmp.eq.s32.totalorder %v330_v2, %v2326_v19  ;;  %v283_v9 = vadd.s32 72, %v2302_v1  ;;  %v821_v10 = vadd.f32 %v2352_v29, %v688_v8 }
  0x87   : > { %vm592_vm3 = vcmp.eq.s32.totalorder %v331_v4, %v2326_v19  ;;  %v719_v11 = vsel %vm591_vm2, 1.0, %v2114_v30  ;;  %vm543_vm4 = vcmp.eq.s32.totalorder %v282_v6, %v2326_v19  ;;  %v314_v21 = vadd.s32 320, %v2302_v1 }
  0x88   : > { %1803 = vmatpush3.bf16.msra.mxu1 %v1802_v7  ;;  %v720_v12 = vsel %vm592_vm3, 1.0, %v2114_v30  ;;  %v852_v13 = vadd.f32 %v2352_v29, %v719_v11  ;;  %vm544_vm5 = vcmp.eq.s32.totalorder %v283_v9, %v2326_v19  ;;  %v671_v14 = vsel %vm543_vm4, 1.0, %v2114_v30 }
  0x89   : > { %v1772_v15 = vpack.c.bf16 %v821_v10, %v820_v3  ;;  %v853_v16 = vadd.f32 %v2352_v29, %v720_v12  ;;  %v672_v17 = vsel %vm544_vm5, 1.0, %v2114_v30  ;;  %v804_v18 = vadd.f32 %v2352_v29, %v671_v14 }
  0x8a   : > { %v805_v20 = vadd.f32 %v2352_v29, %v672_v17  ;;  %v315_v22 = vadd.s32 328, %v2302_v1  ;;  %v300_v23 = vadd.s32 208, %v2302_v1  ;;  %v301_v25 = vadd.s32 216, %v2302_v1 }
  0x8b   : > { %1773 = vmatprep.subr.bf16.mxu0 %v1772_v15  ;;  %v1804_v24 = vpack.c.bf16 %v853_v16, %v852_v13  ;;  %v332_v26 = vadd.s32 464, %v2302_v1  ;;  %v333_v27 = vadd.s32 472, %v2302_v1  ;;  %vm575_vm6 = vcmp.eq.s32.totalorder %v314_v21, %v2326_v19 }
  0x8c   : > { %v1774_v28 = vpack.c.bf16 %v805_v20, %v804_v18  ;;  %vm576_vm7 = vcmp.eq.s32.totalorder %v315_v22, %v2326_v19  ;;  %vm561_vm8 = vcmp.eq.s32.totalorder %v300_v23, %v2326_v19  ;;  %v703_v31 = vsel %vm575_vm6, 1.0, %v2114_v30 }
  0x8d   : > { %1805 = vmatprep.subr.bf16.mxu1 %v1804_v24  ;;  %v704_v32 = vsel %vm576_vm7, 1.0, %v2114_v30  ;;  %vm562_vm9 = vcmp.eq.s32.totalorder %v301_v25, %v2326_v19  ;;  %v689_v33 = vsel %vm561_vm8, 1.0, %v2114_v30  ;;  %v836_v34 = vadd.f32 %v2352_v29, %v703_v31 }
  0x8e   : > { %1775 = vmatpush3.bf16.msra.mxu0 %v1774_v28  ;;  %v837_v35 = vadd.f32 %v2352_v29, %v704_v32  ;;  %v690_v36 = vsel %vm562_vm9, 1.0, %v2114_v30  ;;  %v822_v37 = vadd.f32 %v2352_v29, %v689_v33  ;;  %vm593_vm10 = vcmp.eq.s32.totalorder %v332_v26, %v2326_v19 }
  0x8f   : > { %v823_v38 = vadd.f32 %v2352_v29, %v690_v36  ;;  %vm594_vm11 = vcmp.eq.s32.totalorder %v333_v27, %v2326_v19  ;;  %v284_v39 = vadd.s32 80, %v2302_v1  ;;  %v721_v41 = vsel %vm593_vm10, 1.0, %v2114_v30 }
  0x90   : > { %v1806_v40 = vpack.c.bf16 %v837_v35, %v836_v34  ;;  %v722_v42 = vsel %vm594_vm11, 1.0, %v2114_v30  ;;  %v285_v43 = vadd.s32 88, %v2302_v1  ;;  %v854_v45 = vadd.f32 %v2352_v29, %v721_v41 }
  0x91   : > { %v1776_v44 = vpack.c.bf16 %v823_v38, %v822_v37  ;;  %v855_v46 = vadd.f32 %v2352_v29, %v722_v42  ;;  %vm545_vm12 = vcmp.eq.s32.totalorder %v284_v39, %v2326_v19  ;;  %v316_v48 = vadd.s32 336, %v2302_v1 }
  0x92   : > { %1807 = vmatpush3.bf16.msra.mxu1 %v1806_v40  ;;  %vm546_vm13 = vcmp.eq.s32.totalorder %v285_v43, %v2326_v19  ;;  %v673_v47 = vsel %vm545_vm12, 1.0, %v2114_v30  ;;  %v317_v49 = vadd.s32 344, %v2302_v1  ;;  %v302_v53 = vadd.s32 224, %v2302_v1 }
  0x93   : > { %1777 = vmatprep.subr.bf16.mxu0 %v1776_v44  ;;  %v1808_v50 = vpack.c.bf16 %v855_v46, %v854_v45  ;;  %v674_v51 = vsel %vm546_vm13, 1.0, %v2114_v30  ;;  %v806_v52 = vadd.f32 %v2352_v29, %v673_v47  ;;  %vm577_vm14 = vcmp.eq.s32.totalorder %v316_v48, %v2326_v19 }
  0x94   : > { %v807_v54 = vadd.f32 %v2352_v29, %v674_v51  ;;  %vm578_vm15 = vcmp.eq.s32.totalorder %v317_v49, %v2326_v19  ;;  %v303_v55 = vadd.s32 232, %v2302_v1  ;;  %v705_v56 = vsel %vm577_vm14, 1.0, %v2114_v30 }
  0x95   : > { %1809 = vmatprep.subr.bf16.mxu1 %v1808_v50  ;;  %v706_v57 = vsel %vm578_vm15, 1.0, %v2114_v30  ;;  %vm563_vm0 = vcmp.eq.s32.totalorder %v302_v53, %v2326_v19  ;;  %v334_v58 = vadd.s32 480, %v2302_v1  ;;  %v838_v60 = vadd.f32 %v2352_v29, %v705_v56 }
  0x96   : > { %v1778_v59 = vpack.c.bf16 %v807_v54, %v806_v52  ;;  %v839_v61 = vadd.f32 %v2352_v29, %v706_v57  ;;  %vm564_vm1 = vcmp.eq.s32.totalorder %v303_v55, %v2326_v19  ;;  %v691_v62 = vsel %vm563_vm0, 1.0, %v2114_v30 }
  0x97   : > { %v692_v63 = vsel %vm564_vm1, 1.0, %v2114_v30  ;;  %v335_v0 = vadd.s32 488, %v2302_v1  ;;  %vm595_vm2 = vcmp.eq.s32.totalorder %v334_v58, %v2326_v19  ;;  %v824_v3 = vadd.f32 %v2352_v29, %v691_v62 }
  0x98   : > { %1779 = vmatpush3.bf16.msra.mxu0 %v1778_v59  ;;  %v1810_v2 = vpack.c.bf16 %v839_v61, %v838_v60  ;;  %v825_v4 = vadd.f32 %v2352_v29, %v692_v63  ;;  %v723_v6 = vsel %vm595_vm2, 1.0, %v2114_v30  ;;  %v286_v8 = vadd.s32 96, %v2302_v1  ;;  %v207_v61 = vld [vmem:[%s2296_s4] sm:$0xff] }
  0x99   : > { %vm596_vm3 = vcmp.eq.s32.totalorder %v335_v0, %v2326_v19  ;;  %v856_v7 = vadd.f32 %v2352_v29, %v723_v6  ;;  %v287_v9 = vadd.s32 104, %v2302_v1  ;;  %v318_v12 = vadd.s32 352, %v2302_v1 }
  0x9a   : > { %1811 = vmatpush3.bf16.msra.mxu1 %v1810_v2  ;;  %v1780_v10 = vpack.c.bf16 %v825_v4, %v824_v3  ;;  %v724_v11 = vsel %vm596_vm3, 1.0, %v2114_v30  ;;  %v319_v13 = vadd.s32 360, %v2302_v1  ;;  %vm547_vm4 = vcmp.eq.s32.totalorder %v286_v8, %v2326_v19  ;;  %v216_v3 = vld [vmem:[%s2296_s4 + $0x48] sm:$0xff] }
  0x9b   : > { %v857_v14 = vadd.f32 %v2352_v29, %v724_v11  ;;  %vm548_vm5 = vcmp.eq.s32.totalorder %v287_v9, %v2326_v19  ;;  %v304_v15 = vadd.s32 240, %v2302_v1  ;;  %v675_v16 = vsel %vm547_vm4, 1.0, %v2114_v30 }
  0x9c   : > { %1781 = vmatprep.subr.bf16.mxu0 %v1780_v10  ;;  %v676_v17 = vsel %vm548_vm5, 1.0, %v2114_v30  ;;  %vm579_vm6 = vcmp.eq.s32.totalorder %v318_v12, %v2326_v19  ;;  %vm580_vm7 = vcmp.eq.s32.totalorder %v319_v13, %v2326_v19  ;;  %v808_v20 = vadd.f32 %v2352_v29, %v675_v16  ;;  %v209_v12 = vld [vmem:[%s2296_s4 + $0x10] sm:$0xff] }
  0x9d   : > { %v1812_v18 = vpack.c.bf16 %v857_v14, %v856_v7  ;;  %v809_v21 = vadd.f32 %v2352_v29, %v676_v17  ;;  %v707_v22 = vsel %vm579_vm6, 1.0, %v2114_v30  ;;  %v708_v23 = vsel %vm580_vm7, 1.0, %v2114_v30 }
  0x9e   : > { %v840_v24 = vadd.f32 %v2352_v29, %v707_v22  ;;  %v305_v25 = vadd.s32 248, %v2302_v1  ;;  %vm565_vm8 = vcmp.eq.s32.totalorder %v304_v15, %v2326_v19  ;;  %v841_v27 = vadd.f32 %v2352_v29, %v708_v23 }
  0x9f   : > { %1813 = vmatprep.subr.bf16.mxu1 %v1812_v18  ;;  %v1782_v26 = vpack.c.bf16 %v809_v21, %v808_v20  ;;  %v693_v28 = vsel %vm565_vm8, 1.0, %v2114_v30  ;;  %v336_v31 = vadd.s32 496, %v2302_v1  ;;  %v337_v33 = vadd.s32 504, %v2302_v1  ;;  %v218_v20 = vld [vmem:[%s2296_s4 + $0x58] sm:$0xff]  ;;  %v215_v21 = vld [vmem:[%s2296_s4 + $0x40] sm:$0xff] }
  0xa0   : > { %vm566_vm9 = vcmp.eq.s32.totalorder %v305_v25, %v2326_v19  ;;  %v826_v32 = vadd.f32 %v2352_v29, %v693_v28  ;;  %v288_v34 = vadd.s32 112, %v2302_v1  ;;  %v1814_v35 = vpack.c.bf16 %v841_v27, %v840_v24  ;;  %v224_v25 = vld [vmem:[%s2296_s4 + $0x88] sm:$0xff] }
  0xa1   : > { %1783 = vmatpush3.bf16.msra.mxu0 %v1782_v26  ;;  %v694_v36 = vsel %vm566_vm9, 1.0, %v2114_v30  ;;  %vm597_vm10 = vcmp.eq.s32.totalorder %v336_v31, %v2326_v19  ;;  %v289_v37 = vadd.s32 120, %v2302_v1  ;;  %vm598_vm11 = vcmp.eq.s32.totalorder %v337_v33, %v2326_v19 }
  0xa2   : > { %v827_v38 = vadd.f32 %v2352_v29, %v694_v36  ;;  %v725_v39 = vsel %vm597_vm10, 1.0, %v2114_v30  ;;  %vm549_vm12 = vcmp.eq.s32.totalorder %v288_v34, %v2326_v19  ;;  %1815 = vmatpush3.bf16.msra.mxu1 %v1814_v35  ;;  %v726_v40 = vsel %vm598_vm11, 1.0, %v2114_v30  ;;  %v217_v34 = vld [vmem:[%s2296_s4 + $0x50] sm:$0xff] }
  0xa3   : > { %v858_v41 = vadd.f32 %v2352_v29, %v725_v39  ;;  %vm550_vm13 = vcmp.eq.s32.totalorder %v289_v37, %v2326_v19  ;;  %v677_v42 = vsel %vm549_vm12, 1.0, %v2114_v30  ;;  %v859_v44 = vadd.f32 %v2352_v29, %v726_v40 }
  0xa4   : > { %v1784_v43 = vpack.c.bf16 %v827_v38, %v826_v32  ;;  %v678_v45 = vsel %vm550_vm13, 1.0, %v2114_v30  ;;  %v810_v46 = vadd.f32 %v2352_v29, %v677_v42  ;;  %v320_v48 = vadd.s32 368, %v2302_v1  ;;  %v226_v38 = vld [vmem:[%s2296_s4 + $0x98] sm:$0xff] }
  0xa5   : > { %v811_v47 = vadd.f32 %v2352_v29, %v678_v45  ;;  %v321_v49 = vadd.s32 376, %v2302_v1  ;;  %v354_v50 = vadd.s32 640, %v2302_v1  ;;  %v1816_v51 = vpack.c.bf16 %v859_v44, %v858_v41 }
  0xa6   : > { %1785 = vmatprep.subr.bf16.mxu0 %v1784_v43  ;;  %v355_v52 = vadd.s32 648, %v2302_v1  ;;  %v338_v53 = vadd.s32 512, %v2302_v1  ;;  %v339_v54 = vadd.s32 520, %v2302_v1  ;;  %vm581_vm14 = vcmp.eq.s32.totalorder %v320_v48, %v2326_v19  ;;  %v223_v43 = vld [vmem:[%s2296_s4 + $0x80] sm:$0xff] }
  0xa7   : > { %v1786_v55 = vpack.c.bf16 %v811_v47, %v810_v46  ;;  %vm582_vm15 = vcmp.eq.s32.totalorder %v321_v49, %v2326_v19  ;;  %vm615_vm0 = vcmp.eq.s32.totalorder %v354_v50, %v2326_v19  ;;  %1817 = vmatprep.subr.bf16.mxu1 %v1816_v51  ;;  %v709_v56 = vsel %vm581_vm14, 1.0, %v2114_v30  ;;  %v232_v47 = vld [vmem:[%s2296_s4 + $0xc8] sm:$0xff]  ;;  %v225_v51 = vld [vmem:[%s2296_s4 + $0x90] sm:$0xff] }
  0xa8   : > { %v710_v57 = vsel %vm582_vm15, 1.0, %v2114_v30  ;;  %vm616_vm1 = vcmp.eq.s32.totalorder %v355_v52, %v2326_v19  ;;  %v743_v58 = vsel %vm615_vm0, 1.0, %v2114_v30  ;;  %v842_v59 = vadd.f32 %v2352_v29, %v709_v56 }
  0xa9   : > { %1787 = vmatpush3.bf16.msra.mxu0 %v1786_v55  ;;  %v843_v60 = vadd.f32 %v2352_v29, %v710_v57  ;;  %v744_v62 = vsel %vm616_vm1, 1.0, %v2114_v30  ;;  %v876_v63 = vadd.f32 %v2352_v29, %v743_v58  ;;  %vm599_vm2 = vcmp.eq.s32.totalorder %v338_v53, %v2326_v19  ;;  %v234_v55 = vld [vmem:[%s2296_s4 + $0xd8] sm:$0xff] }
  0xaa   : > { %v877_v0 = vadd.f32 %v2352_v29, %v744_v62  ;;  %vm600_vm3 = vcmp.eq.s32.totalorder %v339_v54, %v2326_v19  ;;  %v386_v2 = vadd.s32 896, %v2302_v1  ;;  %v727_v6 = vsel %vm599_vm2, 1.0, %v2114_v30  ;;  %v231_v62 = vld [vmem:[%s2296_s4 + $0xc0] sm:$0xff] }
  0xab   : > { %v1818_v4 = vpack.c.bf16 %v843_v60, %v842_v59  ;;  %v728_v7 = vsel %vm600_vm3, 1.0, %v2114_v30  ;;  %v387_v8 = vadd.s32 904, %v2302_v1  ;;  %v860_v10 = vadd.f32 %v2352_v29, %v727_v6 }
  0xac   : > { %997 = vmatmul.mubr.f32.vlgmr.msra.gmra.mrb[0].mxu0 %v207_v61  ;;  %v1820_v9 = vpack.c.bf16 %v877_v0, %v876_v63  ;;  %v861_v11 = vadd.f32 %v2352_v29, %v728_v7  ;;  %vm647_vm4 = vcmp.eq.s32.totalorder %v386_v2, %v2326_v19  ;;  %v370_v14 = vadd.s32 768, %v2302_v1 }
  0xad   : > { %1819 = vmatpush3.bf16.msra.mxu1 %v1818_v4  ;;  %vm648_vm5 = vcmp.eq.s32.totalorder %v387_v8, %v2326_v19  ;;  %v775_v13 = vsel %vm647_vm4, 1.0, %v2114_v30  ;;  %1001 = vmatprep.mubr.f32.mxu0 %v216_v3  ;;  %v371_v15 = vadd.s32 776, %v2302_v1  ;;  %v356_v22 = vadd.s32 656, %v2302_v1  ;;  %v233_v4 = vld [vmem:[%s2296_s4 + $0xd0] sm:$0xff] }
  0xae   : > { %1821 = vmatprep.subr.bf16.mxu0 %v1820_v9  ;;  %v1822_v16 = vpack.c.bf16 %v861_v11, %v860_v10  ;;  %v776_v17 = vsel %vm648_vm5, 1.0, %v2114_v30  ;;  %v908_v18 = vadd.f32 %v2352_v29, %v775_v13  ;;  %vm631_vm6 = vcmp.eq.s32.totalorder %v370_v14, %v2326_v19  ;;  %v240_v10 = vld [vmem:[%s2296_s4 + $0x108] sm:$0xff]  ;;  %v242_v13 = vld [vmem:[%s2296_s4 + $0x118] sm:$0xff] }
  0xaf   : > { %v909_v23 = vadd.f32 %v2352_v29, %v776_v17  ;;  %vm632_vm7 = vcmp.eq.s32.totalorder %v371_v15, %v2326_v19  ;;  %v357_v24 = vadd.s32 664, %v2302_v1  ;;  %v759_v26 = vsel %vm631_vm6, 1.0, %v2114_v30 }
  0xb0   : > { %1102 = vmatmul.mubr.f32.vlgmr.msra.gmra.mrb[0].mxu1 %v209_v12  ;;  %1823 = vmatpush3.bf16.msra.mxu0 %v1822_v16  ;;  %v760_v27 = vsel %vm632_vm7, 1.0, %v2114_v30  ;;  %vm617_vm8 = vcmp.eq.s32.totalorder %v356_v22, %v2326_v19  ;;  %v340_v28 = vadd.s32 528, %v2302_v1  ;;  %v892_v32 = vadd.f32 %v2352_v29, %v759_v26  ;;  %v239_v16 = vld [vmem:[%s2296_s4 + $0x100] sm:$0xff]  ;;  %v241_v22 = vld [vmem:[%s2296_s4 + $0x110] sm:$0xff]  ;;  %v250_v26 = vld [vmem:[%s2296_s4 + $0x158] sm:$0xff] }
  0xb1   : > { %v1852_v31 = vpack.c.bf16 %v909_v23, %v908_v18  ;;  %1106 = vmatprep.mubr.f32.mxu1 %v218_v20  ;;  %v893_v33 = vadd.f32 %v2352_v29, %v760_v27  ;;  %1002 = vmatmul.mubr.f32.gmra.mrb[2].mxu0 %v215_v21  ;;  %v745_v35 = vsel %vm617_vm8, 1.0, %v2114_v30  ;;  %vm618_vm9 = vcmp.eq.s32.totalorder %v357_v24, %v2326_v19  ;;  %v248_v23 = vld [vmem:[%s2296_s4 + $0x148] sm:$0xff] }
  0xb2   : > { %v878_v36 = vadd.f32 %v2352_v29, %v745_v35  ;;  %v341_v37 = vadd.s32 536, %v2302_v1  ;;  %vm601_vm10 = vcmp.eq.s32.totalorder %v340_v28, %v2326_v19  ;;  %1006 = vmatprep.mubr.f32.mxu0 %v224_v25  ;;  %v746_v40 = vsel %vm618_vm9, 1.0, %v2114_v30 }
  0xb3   : > { %1853 = vmatprep.subr.bf16.mxu1 %v1852_v31  ;;  %v1854_v39 = vpack.c.bf16 %v893_v33, %v892_v32  ;;  %v729_v41 = vsel %vm601_vm10, 1.0, %v2114_v30  ;;  %v388_v42 = vadd.s32 912, %v2302_v1  ;;  %v879_v44 = vadd.f32 %v2352_v29, %v746_v40 }
  0xb4   : > { %1107 = vmatmul.mubr.f32.gmra.mrb[2].mxu1 %v217_v34  ;;  %vm602_vm11 = vcmp.eq.s32.totalorder %v341_v37, %v2326_v19  ;;  %v862_v45 = vadd.f32 %v2352_v29, %v729_v41  ;;  %v389_v46 = vadd.s32 920, %v2302_v1  ;;  %v372_v49 = vadd.s32 784, %v2302_v1  ;;  %v247_v37 = vld [vmem:[%s2296_s4 + $0x140] sm:$0xff]  ;;  %v249_v41 = vld [vmem:[%s2296_s4 + $0x150] sm:$0xff] }
  0xb5   : > { %1855 = vmatpush3.bf16.msra.mxu1 %v1854_v39  ;;  %v730_v48 = vsel %vm602_vm11, 1.0, %v2114_v30  ;;  %vm649_vm12 = vcmp.eq.s32.totalorder %v388_v42, %v2326_v19  ;;  %1111 = vmatprep.mubr.f32.mxu1 %v226_v38  ;;  %v373_v50 = vadd.s32 792, %v2302_v1  ;;  %v1824_v52 = vpack.c.bf16 %v879_v44, %v878_v36 }
  0xb6   : > { %v863_v53 = vadd.f32 %v2352_v29, %v730_v48  ;;  %vm650_vm13 = vcmp.eq.s32.totalorder %v389_v46, %v2326_v19  ;;  %v777_v54 = vsel %vm649_vm12, 1.0, %v2114_v30  ;;  %1007 = vmatmul.mubr.f32.gmra.mrb[4].mxu0 %v223_v43  ;;  %vm633_vm14 = vcmp.eq.s32.totalorder %v372_v49, %v2326_v19  ;;  %v258_v46 = vld [vmem:[%s2296_s4 + $0x198] sm:$0xff] }
  0xb7   : > { %v778_v56 = vsel %vm650_vm13, 1.0, %v2114_v30  ;;  %v910_v57 = vadd.f32 %v2352_v29, %v777_v54  ;;  %vm634_vm15 = vcmp.eq.s32.totalorder %v373_v50, %v2326_v19  ;;  %1011 = vmatprep.mubr.f32.mxu0 %v232_v47  ;;  %1825 = vmatprep.subr.bf16.mxu0 %v1824_v52  ;;  %v761_v60 = vsel %vm633_vm14, 1.0, %v2114_v30  ;;  %v255_v52 = vld [vmem:[%s2296_s4 + $0x180] sm:$0xff] }
  0xb8   : > { %v1826_v58 = vpack.c.bf16 %v863_v53, %v862_v45  ;;  %v911_v59 = vadd.f32 %v2352_v29, %v778_v56  ;;  %v762_v61 = vsel %vm634_vm15, 1.0, %v2114_v30  ;;  %1112 = vmatmul.mubr.f32.gmra.mrb[4].mxu1 %v225_v51  ;;  %v894_v63 = vadd.f32 %v2352_v29, %v761_v60  ;;  %v256_v45 = vld [vmem:[%s2296_s4 + $0x188] sm:$0xff] }
  0xb9   : > { %v895_v0 = vadd.f32 %v2352_v29, %v762_v61  ;;  %v358_v2 = vadd.s32 672, %v2302_v1  ;;  %v359_v3 = vadd.s32 680, %v2302_v1  ;;  %1116 = vmatprep.mubr.f32.mxu1 %v234_v55  ;;  %v342_v7 = vadd.s32 544, %v2302_v1  ;;  %v264_v56 = vld [vmem:[%s2296_s4 + $0x1c8] sm:$0xff]  ;;  %v257_v61 = vld [vmem:[%s2296_s4 + $0x190] sm:$0xff] }
  0xba   : > { %1827 = vmatpush3.bf16.msra.mxu0 %v1826_v58  ;;  %v1856_v6 = vpack.c.bf16 %v911_v59, %v910_v57  ;;  %v343_v8 = vadd.s32 552, %v2302_v1  ;;  %v390_v9 = vadd.s32 928, %v2302_v1  ;;  %v391_v12 = vadd.s32 936, %v2302_v1 }
  0xbb   : > { %v1858_v11 = vpack.c.bf16 %v895_v0, %v894_v63  ;;  %vm619_vm0 = vcmp.eq.s32.totalorder %v358_v2, %v2326_v19  ;;  %vm620_vm1 = vcmp.eq.s32.totalorder %v359_v3, %v2326_v19  ;;  %1012 = vmatmul.mubr.f32.gmra.mrb[6].mxu0 %v231_v62  ;;  %vm603_vm2 = vcmp.eq.s32.totalorder %v342_v7, %v2326_v19  ;;  %v266_v3 = vld [vmem:[%s2296_s4 + $0x1d8] sm:$0xff] }
  0xbc   : > { %1857 = vmatprep.subr.bf16.mxu1 %v1856_v6  ;;  %v747_v14 = vsel %vm619_vm0, 1.0, %v2114_v30  ;;  %v748_v15 = vsel %vm620_vm1, 1.0, %v2114_v30  ;;  %vm604_vm3 = vcmp.eq.s32.totalorder %v343_v8, %v2326_v19  ;;  %1117 = vmatmul.mubr.f32.gmra.mrb[6].mxu1 %v233_v4  ;;  %v731_v20 = vsel %vm603_vm2, 1.0, %v2114_v30 }
  0xbd   : > { %1859 = vmatpush3.bf16.msra.mxu1 %v1858_v11  ;;  %v880_v17 = vadd.f32 %v2352_v29, %v747_v14  ;;  %v881_v18 = vadd.f32 %v2352_v29, %v748_v15  ;;  %v732_v21 = vsel %vm604_vm3, 1.0, %v2114_v30  ;;  %1016 = vmatprep.mubr.f32.mxu0 %v240_v10  ;;  %v864_v24 = vadd.f32 %v2352_v29, %v731_v20  ;;  %v263_v10 = vld [vmem:[%s2296_s4 + $0x1c0] sm:$0xff]  ;;  %v265_v14 = vld [vmem:[%s2296_s4 + $0x1d0] sm:$0xff]  ;;  %v212_v15 = vld [vmem:[%s2296_s4 + $0x28] sm:$0xff] }
  0xbe   : > { %v865_v25 = vadd.f32 %v2352_v29, %v732_v21  ;;  %vm651_vm4 = vcmp.eq.s32.totalorder %v390_v9, %v2326_v19  ;;  %vm652_vm5 = vcmp.eq.s32.totalorder %v391_v12, %v2326_v19  ;;  %1121 = vmatprep.mubr.f32.mxu1 %v242_v13  ;;  %v374_v32 = vadd.s32 800, %v2302_v1  ;;  %v214_v20 = vld [vmem:[%s2296_s4 + $0x38] sm:$0xff] }
  0xbf   : > { %v1828_v27 = vpack.c.bf16 %v881_v18, %v880_v17  ;;  %v779_v28 = vsel %vm651_vm4, 1.0, %v2114_v30  ;;  %v780_v31 = vsel %vm652_vm5, 1.0, %v2114_v30  ;;  %1017 = vmatmul.mubr.f32.gmra.mrb[8].mxu0 %v239_v16  ;;  %v375_v36 = vadd.s32 808, %v2302_v1 }
  0xc0   : > { %v1830_v33 = vpack.c.bf16 %v865_v25, %v864_v24  ;;  %v912_v34 = vadd.f32 %v2352_v29, %v779_v28  ;;  %v913_v35 = vadd.f32 %v2352_v29, %v780_v31  ;;  %1122 = vmatmul.mubr.f32.gmra.mrb[8].mxu1 %v241_v22  ;;  %1021 = vmatprep.mubr.f32.mxu0 %v248_v23  ;;  %v360_v38 = vadd.s32 688, %v2302_v1 }
  0xc1   : > { %1829 = vmatprep.subr.bf16.mxu0 %v1828_v27  ;;  %vm635_vm6 = vcmp.eq.s32.totalorder %v374_v32, %v2326_v19  ;;  %v361_v39 = vadd.s32 696, %v2302_v1  ;;  %v344_v40 = vadd.s32 560, %v2302_v1  ;;  %1126 = vmatprep.mubr.f32.mxu1 %v250_v26  ;;  %vm636_vm7 = vcmp.eq.s32.totalorder %v375_v36, %v2326_v19 }
  0xc2   : > { %1831 = vmatpush3.bf16.msra.mxu0 %v1830_v33  ;;  %v1860_v42 = vpack.c.bf16 %v913_v35, %v912_v34  ;;  %v763_v43 = vsel %vm635_vm6, 1.0, %v2114_v30  ;;  %v345_v44 = vadd.s32 568, %v2302_v1  ;;  %v764_v47 = vsel %vm636_vm7, 1.0, %v2114_v30 }
  0xc3   : > { %v896_v48 = vadd.f32 %v2352_v29, %v763_v43  ;;  %vm621_vm8 = vcmp.eq.s32.totalorder %v360_v38, %v2326_v19  ;;  %vm622_vm9 = vcmp.eq.s32.totalorder %v361_v39, %v2326_v19  ;;  %1022 = vmatmul.mubr.f32.gmra.mrb[10].mxu0 %v247_v37  ;;  %v897_v49 = vadd.f32 %v2352_v29, %v764_v47 }
  0xc4   : > { %1861 = vmatprep.subr.bf16.mxu1 %v1860_v42  ;;  %v749_v50 = vsel %vm621_vm8, 1.0, %v2114_v30  ;;  %v750_v51 = vsel %vm622_vm9, 1.0, %v2114_v30  ;;  %vm605_vm10 = vcmp.eq.s32.totalorder %v344_v40, %v2326_v19  ;;  %1127 = vmatmul.mubr.f32.gmra.mrb[10].mxu1 %v249_v41  ;;  %vm606_vm11 = vcmp.eq.s32.totalorder %v345_v44, %v2326_v19 }
  0xc5   : > { %v882_v53 = vadd.f32 %v2352_v29, %v749_v50  ;;  %v883_v54 = vadd.f32 %v2352_v29, %v750_v51  ;;  %v733_v55 = vsel %vm605_vm10, 1.0, %v2114_v30  ;;  %1026 = vmatprep.mubr.f32.mxu0 %v256_v45  ;;  %1131 = vmatprep.mubr.f32.mxu1 %v258_v46  ;;  %v1862_v57 = vpack.c.bf16 %v897_v49, %v896_v48 }
  0xc6   : > { %v734_v58 = vsel %vm606_vm11, 1.0, %v2114_v30  ;;  %v866_v59 = vadd.f32 %v2352_v29, %v733_v55  ;;  %v392_v60 = vadd.s32 944, %v2302_v1  ;;  %v393_v0 = vadd.s32 952, %v2302_v1 }
  0xc7   : > { %v1832_v62 = vpack.c.bf16 %v883_v54, %v882_v53  ;;  %v867_v63 = vadd.f32 %v2352_v29, %v734_v58  ;;  %v376_v2 = vadd.s32 816, %v2302_v1  ;;  %1027 = vmatmul.mubr.f32.gmra.mrb[12].mxu0 %v255_v52  ;;  %1863 = vmatpush3.bf16.msra.mxu1 %v1862_v57  ;;  %v377_v4 = vadd.s32 824, %v2302_v1 }
  0xc8   : > { %vm653_vm12 = vcmp.eq.s32.totalorder %v392_v60, %v2326_v19  ;;  %v362_v6 = vadd.s32 704, %v2302_v1  ;;  %v363_v7 = vadd.s32 712, %v2302_v1  ;;  %1031 = vmatprep.mubr.f32.mxu0 %v264_v56  ;;  %vm654_vm13 = vcmp.eq.s32.totalorder %v393_v0, %v2326_v19  ;;  %1132 = vmatmul.mubr.f32.gmra.mrb[12].mxu1 %v257_v61 }
  0xc9   : > { %1833 = vmatprep.subr.bf16.mxu0 %v1832_v62  ;;  %v1834_v8 = vpack.c.bf16 %v867_v63, %v866_v59  ;;  %v781_v9 = vsel %vm653_vm12, 1.0, %v2114_v30  ;;  %vm637_vm14 = vcmp.eq.s32.totalorder %v376_v2, %v2326_v19  ;;  %v782_v11 = vsel %vm654_vm13, 1.0, %v2114_v30  ;;  %1136 = vmatprep.mubr.f32.mxu1 %v266_v3 }
  0xca   : > { %v914_v12 = vadd.f32 %v2352_v29, %v781_v9  ;;  %vm638_vm15 = vcmp.eq.s32.totalorder %v377_v4, %v2326_v19  ;;  %v765_v13 = vsel %vm637_vm14, 1.0, %v2114_v30  ;;  %v915_v16 = vadd.f32 %v2352_v29, %v782_v11 }
  0xcb   : > { %1835 = vmatpush3.bf16.msra.mxu0 %v1834_v8  ;;  %v766_v17 = vsel %vm638_vm15, 1.0, %v2114_v30  ;;  %v898_v18 = vadd.f32 %v2352_v29, %v765_v13  ;;  %vm623_vm0 = vcmp.eq.s32.totalorder %v362_v6, %v2326_v19  ;;  %vm624_vm1 = vcmp.eq.s32.totalorder %v363_v7, %v2326_v19 }
  0xcc   : > { %v899_v21 = vadd.f32 %v2352_v29, %v766_v17  ;;  %v751_v22 = vsel %vm623_vm0, 1.0, %v2114_v30  ;;  %v346_v23 = vadd.s32 576, %v2302_v1  ;;  %1032 = vmatmul.mubr.f32.gmra.mrb[14].mxu0 %v263_v10  ;;  %v1864_v24 = vpack.c.bf16 %v915_v16, %v914_v12  ;;  %1137 = vmatmul.mubr.f32.gmra.mrb[14].mxu1 %v265_v14 }
  0xcd   : > { %v752_v25 = vsel %vm624_vm1, 1.0, %v2114_v30  ;;  %v884_v26 = vadd.f32 %v2352_v29, %v751_v22  ;;  %v347_v27 = vadd.s32 584, %v2302_v1  ;;  %1206 = vmatprep.mubr.f32.mxu0 %v212_v15  ;;  %v394_v32 = vadd.s32 960, %v2302_v1  ;;  %1311 = vmatprep.mubr.f32.mxu1 %v214_v20 }
  0xce   : > { %v1866_v28 = vpack.c.bf16 %v899_v21, %v898_v18  ;;  %v885_v31 = vadd.f32 %v2352_v29, %v752_v25  ;;  %vm607_vm2 = vcmp.eq.s32.totalorder %v346_v23, %v2326_v19  ;;  %1865 = vmatprep.subr.bf16.mxu1 %v1864_v24  ;;  %v395_v34 = vadd.s32 968, %v2302_v1 }
  0xcf   : > { %vm608_vm3 = vcmp.eq.s32.totalorder %v347_v27, %v2326_v19  ;;  %v735_v33 = vsel %vm607_vm2, 1.0, %v2114_v30  ;;  %v378_v35 = vadd.s32 832, %v2302_v1  ;;  %vm655_vm4 = vcmp.eq.s32.totalorder %v394_v32, %v2326_v19 }
  0xd0   : > { %1867 = vmatpush3.bf16.msra.mxu1 %v1866_v28  ;;  %v1836_v36 = vpack.c.bf16 %v885_v31, %v884_v26  ;;  %v736_v37 = vsel %vm608_vm3, 1.0, %v2114_v30  ;;  %v868_v38 = vadd.f32 %v2352_v29, %v735_v33  ;;  %vm656_vm5 = vcmp.eq.s32.totalorder %v395_v34, %v2326_v19 }
  0xd1   : > { %v869_v39 = vadd.f32 %v2352_v29, %v736_v37  ;;  %v783_v40 = vsel %vm655_vm4, 1.0, %v2114_v30  ;;  %v379_v41 = vadd.s32 840, %v2302_v1  ;;  %v784_v42 = vsel %vm656_vm5, 1.0, %v2114_v30 }
  0xd2   : > { %1837 = vmatprep.subr.bf16.mxu0 %v1836_v36  ;;  %v916_v43 = vadd.f32 %v2352_v29, %v783_v40  ;;  %vm639_vm6 = vcmp.eq.s32.totalorder %v378_v35, %v2326_v19  ;;  %v364_v44 = vadd.s32 720, %v2302_v1  ;;  %v917_v46 = vadd.f32 %v2352_v29, %v784_v42 }
  0xd3   : > { %v1838_v45 = vpack.c.bf16 %v869_v39, %v868_v38  ;;  %vm640_vm7 = vcmp.eq.s32.totalorder %v379_v41, %v2326_v19  ;;  %v767_v47 = vsel %vm639_vm6, 1.0, %v2114_v30  ;;  %v365_v50 = vadd.s32 728, %v2302_v1 }
  0xd4   : > { %v768_v48 = vsel %vm640_vm7, 1.0, %v2114_v30  ;;  %v900_v49 = vadd.f32 %v2352_v29, %v767_v47  ;;  %vm625_vm8 = vcmp.eq.s32.totalorder %v364_v44, %v2326_v19  ;;  %v1868_v51 = vpack.c.bf16 %v917_v46, %v916_v43 }
  0xd5   : > { %1839 = vmatpush3.bf16.msra.mxu0 %v1838_v45  ;;  %v901_v52 = vadd.f32 %v2352_v29, %v768_v48  ;;  %v753_v53 = vsel %vm625_vm8, 1.0, %v2114_v30  ;;  %v348_v54 = vadd.s32 592, %v2302_v1  ;;  %vm626_vm9 = vcmp.eq.s32.totalorder %v365_v50, %v2326_v19 }
  0xd6   : > { %v886_v55 = vadd.f32 %v2352_v29, %v753_v53  ;;  %v349_v56 = vadd.s32 600, %v2302_v1  ;;  %v396_v57 = vadd.s32 976, %v2302_v1  ;;  %1869 = vmatprep.subr.bf16.mxu1 %v1868_v51  ;;  %v754_v59 = vsel %vm626_vm9, 1.0, %v2114_v30 }
  0xd7   : > { %v1870_v58 = vpack.c.bf16 %v901_v52, %v900_v49  ;;  %vm609_vm10 = vcmp.eq.s32.totalorder %v348_v54, %v2326_v19  ;;  %v397_v60 = vadd.s32 984, %v2302_v1  ;;  %v887_v61 = vadd.f32 %v2352_v29, %v754_v59 }
  0xd8   : > { %vm610_vm11 = vcmp.eq.s32.totalorder %v349_v56, %v2326_v19  ;;  %v737_v62 = vsel %vm609_vm10, 1.0, %v2114_v30  ;;  %vm657_vm12 = vcmp.eq.s32.totalorder %v396_v57, %v2326_v19  ;;  %v380_v9 = vadd.s32 848, %v2302_v1 }
  0xd9   : > { %1871 = vmatpush3.bf16.msra.mxu1 %v1870_v58  ;;  %v738_v63 = vsel %vm610_vm11, 1.0, %v2114_v30  ;;  %v870_v0 = vadd.f32 %v2352_v29, %v737_v62  ;;  %vm658_vm13 = vcmp.eq.s32.totalorder %v397_v60, %v2326_v19  ;;  %v785_v2 = vsel %vm657_vm12, 1.0, %v2114_v30 }
  0xda   : > { %v1840_v3 = vpack.c.bf16 %v887_v61, %v886_v55  ;;  %v871_v4 = vadd.f32 %v2352_v29, %v738_v63  ;;  %v786_v6 = vsel %vm658_vm13, 1.0, %v2114_v30  ;;  %v918_v7 = vadd.f32 %v2352_v29, %v785_v2 }
  0xdb   : > { %v919_v8 = vadd.f32 %v2352_v29, %v786_v6  ;;  %v381_v10 = vadd.s32 856, %v2302_v1  ;;  %v366_v11 = vadd.s32 736, %v2302_v1  ;;  %v367_v13 = vadd.s32 744, %v2302_v1 }
  0xdc   : > { %1841 = vmatprep.subr.bf16.mxu0 %v1840_v3  ;;  %v1842_v12 = vpack.c.bf16 %v871_v4, %v870_v0  ;;  %v350_v14 = vadd.s32 608, %v2302_v1  ;;  %v351_v15 = vadd.s32 616, %v2302_v1  ;;  %vm641_vm14 = vcmp.eq.s32.totalorder %v380_v9, %v2326_v19 }
  0xdd   : > { %v1872_v16 = vpack.c.bf16 %v919_v8, %v918_v7  ;;  %vm642_vm15 = vcmp.eq.s32.totalorder %v381_v10, %v2326_v19  ;;  %vm627_vm0 = vcmp.eq.s32.totalorder %v366_v11, %v2326_v19  ;;  %v769_v17 = vsel %vm641_vm14, 1.0, %v2114_v30 }
  0xde   : > { %1843 = vmatpush3.bf16.msra.mxu0 %v1842_v12  ;;  %v770_v18 = vsel %vm642_vm15, 1.0, %v2114_v30  ;;  %vm628_vm1 = vcmp.eq.s32.totalorder %v367_v13, %v2326_v19  ;;  %v755_v20 = vsel %vm627_vm0, 1.0, %v2114_v30  ;;  %v902_v21 = vadd.f32 %v2352_v29, %v769_v17  ;;  %v211_v13 = vld [vmem:[%s2296_s4 + $0x20] sm:$0xff]  ;;  %v222_v17 = vld [vmem:[%s2296_s4 + $0x78] sm:$0xff] }
  0xdf   : > { %1873 = vmatprep.subr.bf16.mxu1 %v1872_v16  ;;  %v903_v22 = vadd.f32 %v2352_v29, %v770_v18  ;;  %v756_v23 = vsel %vm628_vm1, 1.0, %v2114_v30  ;;  %v888_v24 = vadd.f32 %v2352_v29, %v755_v20  ;;  %vm611_vm2 = vcmp.eq.s32.totalorder %v350_v14, %v2326_v19  ;;  %v220_v14 = vld [vmem:[%s2296_s4 + $0x68] sm:$0xff]  ;;  %v213_v16 = vld [vmem:[%s2296_s4 + $0x30] sm:$0xff]  ;;  %v227_v20 = vld [vmem:[%s2296_s4 + $0xa0] sm:$0xff] }
  0xe0   : > { %v889_v25 = vadd.f32 %v2352_v29, %v756_v23  ;;  %vm612_vm3 = vcmp.eq.s32.totalorder %v351_v15, %v2326_v19  ;;  %v398_v26 = vadd.s32 992, %v2302_v1  ;;  %v739_v28 = vsel %vm611_vm2, 1.0, %v2114_v30  ;;  %v228_v18 = vld [vmem:[%s2296_s4 + $0xa8] sm:$0xff]  ;;  %v229_v23 = vld [vmem:[%s2296_s4 + $0xb0] sm:$0xff] }
  0xe1   : > { %v1874_v27 = vpack.c.bf16 %v903_v22, %v902_v21  ;;  %v740_v31 = vsel %vm612_vm3, 1.0, %v2114_v30  ;;  %v399_v32 = vadd.s32 1000, %v2302_v1  ;;  %v872_v34 = vadd.f32 %v2352_v29, %v739_v28  ;;  %v230_v21 = vld [vmem:[%s2296_s4 + $0xb8] sm:$0xff]  ;;  %v236_v22 = vld [vmem:[%s2296_s4 + $0xe8] sm:$0xff]  ;;  %v243_v28 = vld [vmem:[%s2296_s4 + $0x120] sm:$0xff] }
  0xe2   : > { %v1844_v33 = vpack.c.bf16 %v889_v25, %v888_v24  ;;  %v873_v35 = vadd.f32 %v2352_v29, %v740_v31  ;;  %vm659_vm4 = vcmp.eq.s32.totalorder %v398_v26, %v2326_v19  ;;  %v382_v37 = vadd.s32 864, %v2302_v1  ;;  %v235_v24 = vld [vmem:[%s2296_s4 + $0xe0] sm:$0xff]  ;;  %v238_v25 = vld [vmem:[%s2296_s4 + $0xf8] sm:$0xff]  ;;  %v244_v26 = vld [vmem:[%s2296_s4 + $0x128] sm:$0xff] }
  0xe3   : > { %1875 = vmatpush3.bf16.msra.mxu1 %v1874_v27  ;;  %vm660_vm5 = vcmp.eq.s32.totalorder %v399_v32, %v2326_v19  ;;  %v787_v36 = vsel %vm659_vm4, 1.0, %v2114_v30  ;;  %v383_v38 = vadd.s32 872, %v2302_v1  ;;  %v368_v42 = vadd.s32 752, %v2302_v1  ;;  %v237_v27 = vld [vmem:[%s2296_s4 + $0xf0] sm:$0xff]  ;;  %v246_v31 = vld [vmem:[%s2296_s4 + $0x138] sm:$0xff]  ;;  %v252_v32 = vld [vmem:[%s2296_s4 + $0x168] sm:$0xff] }
  0xe4   : > { %1845 = vmatprep.subr.bf16.mxu0 %v1844_v33  ;;  %v1846_v39 = vpack.c.bf16 %v873_v35, %v872_v34  ;;  %v788_v40 = vsel %vm660_vm5, 1.0, %v2114_v30  ;;  %v920_v41 = vadd.f32 %v2352_v29, %v787_v36  ;;  %vm643_vm6 = vcmp.eq.s32.totalorder %v382_v37, %v2326_v19  ;;  %v245_v33 = vld [vmem:[%s2296_s4 + $0x130] sm:$0xff]  ;;  %v251_v34 = vld [vmem:[%s2296_s4 + $0x160] sm:$0xff]  ;;  %v254_v35 = vld [vmem:[%s2296_s4 + $0x178] sm:$0xff] }
  0xe5   : > { %v921_v43 = vadd.f32 %v2352_v29, %v788_v40  ;;  %vm644_vm7 = vcmp.eq.s32.totalorder %v383_v38, %v2326_v19  ;;  %v369_v44 = vadd.s32 760, %v2302_v1  ;;  %v771_v45 = vsel %vm643_vm6, 1.0, %v2114_v30  ;;  %v260_v36 = vld [vmem:[%s2296_s4 + $0x1a8] sm:$0xff]  ;;  %v253_v37 = vld [vmem:[%s2296_s4 + $0x170] sm:$0xff]  ;;  %v259_v38 = vld [vmem:[%s2296_s4 + $0x1a0] sm:$0xff] }
  0xe6   : > { %1847 = vmatpush3.bf16.msra.mxu0 %v1846_v39  ;;  %v772_v46 = vsel %vm644_vm7, 1.0, %v2114_v30  ;;  %vm629_vm8 = vcmp.eq.s32.totalorder %v368_v42, %v2326_v19  ;;  %v352_v47 = vadd.s32 624, %v2302_v1  ;;  %v904_v49 = vadd.f32 %v2352_v29, %v771_v45  ;;  %v262_v39 = vld [vmem:[%s2296_s4 + $0x1b8] sm:$0xff]  ;;  %v268_v40 = vld [vmem:[%s2296_s4 + $0x1e8] sm:$0xff]  ;;  %v267_v42 = vld [vmem:[%s2296_s4 + $0x1e0] sm:$0xff] }
  0xe7   : > { %v1876_v48 = vpack.c.bf16 %v921_v43, %v920_v41  ;;  %v905_v50 = vadd.f32 %v2352_v29, %v772_v46  ;;  %vm630_vm9 = vcmp.eq.s32.totalorder %v369_v44, %v2326_v19  ;;  %v757_v51 = vsel %vm629_vm8, 1.0, %v2114_v30  ;;  %v261_v41 = vld [vmem:[%s2296_s4 + $0x1b0] sm:$0xff]  ;;  %v270_v43 = vld [vmem:[%s2296_s4 + $0x1f8] sm:$0xff] }
  0xe8   : > { %v758_v52 = vsel %vm630_vm9, 1.0, %v2114_v30  ;;  %v353_v53 = vadd.s32 632, %v2302_v1  ;;  %vm613_vm10 = vcmp.eq.s32.totalorder %v352_v47, %v2326_v19  ;;  %v890_v55 = vadd.f32 %v2352_v29, %v757_v51  ;;  %v269_v44 = vld [vmem:[%s2296_s4 + $0x1f0] sm:$0xff] }
  0xe9   : > { %1877 = vmatprep.subr.bf16.mxu1 %v1876_v48  ;;  %v1878_v54 = vpack.c.bf16 %v905_v50, %v904_v49  ;;  %v891_v56 = vadd.f32 %v2352_v29, %v758_v52  ;;  %v741_v57 = vsel %vm613_vm10, 1.0, %v2114_v30  ;;  %v400_v59 = vadd.s32 1008, %v2302_v1 }
  0xea   : > { %vm614_vm11 = vcmp.eq.s32.totalorder %v353_v53, %v2326_v19  ;;  %v874_v58 = vadd.f32 %v2352_v29, %v741_v57  ;;  %v401_v60 = vadd.s32 1016, %v2302_v1  ;;  %v384_v63 = vadd.s32 880, %v2302_v1 }
  0xeb   : > { %1879 = vmatpush3.bf16.msra.mxu1 %v1878_v54  ;;  %v1848_v61 = vpack.c.bf16 %v891_v56, %v890_v55  ;;  %v742_v62 = vsel %vm614_vm11, 1.0, %v2114_v30  ;;  %v385_v0 = vadd.s32 888, %v2302_v1  ;;  %vm661_vm12 = vcmp.eq.s32.totalorder %v400_v59, %v2326_v19 }
  0xec   : > { %v875_v2 = vadd.f32 %v2352_v29, %v742_v62  ;;  %vm662_vm13 = vcmp.eq.s32.totalorder %v401_v60, %v2326_v19  ;;  %v789_v3 = vsel %vm661_vm12, 1.0, %v2114_v30  ;;  %vm645_vm14 = vcmp.eq.s32.totalorder %v384_v63, %v2326_v19 }
  0xed   : > { %1849 = vmatprep.subr.bf16.mxu0 %v1848_v61  ;;  %v790_v4 = vsel %vm662_vm13, 1.0, %v2114_v30  ;;  %vm646_vm15 = vcmp.eq.s32.totalorder %v385_v0, %v2326_v19  ;;  %v922_v7 = vadd.f32 %v2352_v29, %v789_v3  ;;  %v773_v9 = vsel %vm645_vm14, 1.0, %v2114_v30 }
  0xee   : > { %v1850_v6 = vpack.c.bf16 %v875_v2, %v874_v58  ;;  %v923_v8 = vadd.f32 %v2352_v29, %v790_v4  ;;  %v774_v10 = vsel %vm646_vm15, 1.0, %v2114_v30  ;;  %v906_v11 = vadd.f32 %v2352_v29, %v773_v9  ;;  %v219_v30 = vld [vmem:[%s2296_s4 + $0x60] sm:$0xff] }
  0xef   : > { %v907_v19 = vadd.f32 %v2352_v29, %v774_v10  ;;  %v221_v29 = vld [vmem:[%s2296_s4 + $0x70] sm:$0xff] }
  0xf0   : > { %1851 = vmatpush3.bf16.msra.mxu0 %v1850_v6  ;;  %v1880_v12 = vpack.c.bf16 %v923_v8, %v922_v7 }
  0xf1   : > { %v1882_v15 = vpack.c.bf16 %v907_v19, %v906_v11 }
  0xf2   : > { %1881 = vmatprep.subr.bf16.mxu1 %v1880_v12 }
  0xf3   : > { %1207 = vmatmul.mubr.f32.vlgmr.msra.gmra.mrb[16].mxu0 %v211_v13  ;;  %1883 = vmatpush3.bf16.msra.mxu1 %v1882_v15 }
  0xf4   : > { %1211 = vmatprep.mubr.f32.mxu0 %v220_v14 }
  0xf6   : > { %1312 = vmatmul.mubr.f32.vlgmr.msra.gmra.mrb[16].mxu1 %v213_v16 }
  0xf7   : > { %1212 = vmatmul.mubr.f32.gmra.mrb[18].mxu0 %v219_v30  ;;  %1316 = vmatprep.mubr.f32.mxu1 %v222_v17 }
  0xf8   : > { %1216 = vmatprep.mubr.f32.mxu0 %v228_v18 }
  0xfa   : > { %1317 = vmatmul.mubr.f32.gmra.mrb[18].mxu1 %v221_v29 }
  0xfb   : > { %1217 = vmatmul.mubr.f32.gmra.mrb[20].mxu0 %v227_v20  ;;  %1321 = vmatprep.mubr.f32.mxu1 %v230_v21 }
  0xfc   : > { %1221 = vmatprep.mubr.f32.mxu0 %v236_v22 }
  0xfe   : > { %1322 = vmatmul.mubr.f32.gmra.mrb[20].mxu1 %v229_v23 }
  0xff   : > { %1222 = vmatmul.mubr.f32.gmra.mrb[22].mxu0 %v235_v24  ;;  %1326 = vmatprep.mubr.f32.mxu1 %v238_v25 }
 0x100   : > { %1226 = vmatprep.mubr.f32.mxu0 %v244_v26 }
 0x102   : > { %1327 = vmatmul.mubr.f32.gmra.mrb[22].mxu1 %v237_v27 }
 0x103   : > { %1227 = vmatmul.mubr.f32.gmra.mrb[24].mxu0 %v243_v28  ;;  %1331 = vmatprep.mubr.f32.mxu1 %v246_v31 }
 0x104   : > { %1231 = vmatprep.mubr.f32.mxu0 %v252_v32 }
 0x106   : > { %1332 = vmatmul.mubr.f32.gmra.mrb[24].mxu1 %v245_v33 }
 0x107   : > { %1232 = vmatmul.mubr.f32.gmra.mrb[26].mxu0 %v251_v34  ;;  %1336 = vmatprep.mubr.f32.mxu1 %v254_v35 }
 0x108   : > { %1236 = vmatprep.mubr.f32.mxu0 %v260_v36 }
 0x10a   : > { %1337 = vmatmul.mubr.f32.gmra.mrb[26].mxu1 %v253_v37 }
 0x10b   : > { %1237 = vmatmul.mubr.f32.gmra.mrb[28].mxu0 %v259_v38  ;;  %1341 = vmatprep.mubr.f32.mxu1 %v262_v39 }
 0x10c   : > { %1241 = vmatprep.mubr.f32.mxu0 %v268_v40  ;;  %v1963_v40 = vld [vmem:[#allocation3] sm:$0x3] }
 0x10d   : > { %vm1371_vm0 = vcmp.eq.s32.totalorder %v1963_v40, 1 }
 0x10e   : > { %1342 = vmatmul.mubr.f32.gmra.mrb[28].mxu1 %v261_v41 }
 0x10f   : > { %1242 = vmatmul.mubr.f32.gmra.mrb[30].mxu0 %v267_v42  ;;  %1346 = vmatprep.mubr.f32.mxu1 %v270_v43  ;;  %v2115_v43 = vmov 1.0  }
 0x112   : > { %1347 = vmatmul.mubr.f32.gmra.mrb[30].mxu1 %v269_v44  ;;  %v1372_v44 = vsel %vm1371_vm0, 0.0009765625, %v2115_v43 }
 0x17f   : > { %v1564_v45 = vpop.f32.mrb[0].mxu0 }
 0x180   : > { %v1565_v46 = vpop.f32.mrb[1].mxu0 }
 0x181   : > { %v1566_v47 = vadd.f32 %v1565_v46, %v1564_v45 }
 0x183   : > { %v1620_v48 = vpop.f32.mrb[0].mxu1 }
 0x184   : > { %v1621_v49 = vpop.f32.mrb[1].mxu1  ;;  %v1567_v50 = vpop.f32.mrb[2].mxu0 }
 0x185   : > { %v1622_v51 = vadd.f32 %v1621_v49, %v1620_v48  ;;  %v1568_v52 = vpop.f32.mrb[3].mxu0 }
 0x186   : > { %v1569_v53 = vadd.f32 %v1568_v52, %v1567_v50 }
 0x187   : > { %v1104_v54 = vadd.f32 %v1622_v51, %v1566_v47  ;;  %v1623_v55 = vpop.f32.mrb[2].mxu1  ;;  %v2930_v51 = vrot.slane %v1372_v44, %v794_v5 }
 0x188   : > { %v1624_v56 = vpop.f32.mrb[3].mxu1 }
 0x189   : > { %v1625_v57 = vadd.f32 %v1624_v56, %v1623_v55  ;;  %v1570_v58 = vpop.f32.mrb[4].mxu0 }
 0x18a   : > { %v1571_v59 = vpop.f32.mrb[5].mxu0 }
 0x18b   : > { %v1109_v60 = vadd.f32 %v1625_v57, %v1569_v53  ;;  %v1626_v61 = vpop.f32.mrb[4].mxu1  ;;  %v1572_v62 = vadd.f32 %v1571_v59, %v1570_v58 }
 0x18c   : > { %v1627_v63 = vpop.f32.mrb[5].mxu1 }
 0x18d   : > { %v1628_v0 = vadd.f32 %v1627_v63, %v1626_v61 }
 0x18e   : > { %v1573_v2 = vpop.f32.mrb[6].mxu0 }
 0x18f   : > { %v2915_v3 = vadd.f32 %v1628_v0, %v1572_v62  ;;  %v1629_v4 = vpop.f32.mrb[6].mxu1  ;;  %v1574_v6 = vpop.f32.mrb[7].mxu0 }
 0x190   : > { %v1575_v7 = vadd.f32 %v1574_v6, %v1573_v2  ;;  %v1630_v8 = vpop.f32.mrb[7].mxu1 }
 0x191   : > { %v1631_v9 = vadd.f32 %v1630_v8, %v1629_v4 }
 0x192   : > { %v1576_v10 = vpop.f32.mrb[8].mxu0 }
 0x193   : > { %v2917_v11 = vadd.f32 %v1631_v9, %v1575_v7  ;;  %v1632_v12 = vpop.f32.mrb[8].mxu1  ;;  %v1577_v19 = vpop.f32.mrb[9].mxu0 }
 0x194   : > { %v1578_v13 = vadd.f32 %v1577_v19, %v1576_v10  ;;  %v1633_v14 = vpop.f32.mrb[9].mxu1 }
 0x195   : > { %v1634_v15 = vadd.f32 %v1633_v14, %v1632_v12 }
 0x196   : > { %v1579_v16 = vpop.f32.mrb[10].mxu0 }
 0x197   : > { %v2919_v30 = vadd.f32 %v1634_v15, %v1578_v13  ;;  %v1635_v17 = vpop.f32.mrb[10].mxu1  ;;  %v1580_v18 = vpop.f32.mrb[11].mxu0 }
 0x198   : > { %v1581_v29 = vadd.f32 %v1580_v18, %v1579_v16  ;;  %v1636_v20 = vpop.f32.mrb[11].mxu1 }
 0x199   : > { %v1637_v21 = vadd.f32 %v1636_v20, %v1635_v17 }
 0x19a   : > { %v1582_v22 = vpop.f32.mrb[12].mxu0 }
 0x19b   : > { %v2921_v23 = vadd.f32 %v1637_v21, %v1581_v29  ;;  %v1583_v24 = vpop.f32.mrb[13].mxu0  ;;  %v1638_v25 = vpop.f32.mrb[12].mxu1 }
 0x19c   : > { %v1584_v26 = vadd.f32 %v1583_v24, %v1582_v22  ;;  %v1639_v27 = vpop.f32.mrb[13].mxu1 }
 0x19d   : > { %v1640_v28 = vadd.f32 %v1639_v27, %v1638_v25 }
 0x19f   : > { %v1585_v31 = vpop.f32.mrb[14].mxu0  ;;  %v2923_v32 = vadd.f32 %v1640_v28, %v1584_v26  ;;  %v1641_v33 = vpop.f32.mrb[14].mxu1 }
 0x1a0   : > { %v1586_v34 = vpop.f32.mrb[15].mxu0  ;;  %v1642_v36 = vpop.f32.mrb[15].mxu1 }
 0x1a1   : > { %v1587_v35 = vadd.f32 %v1586_v34, %v1585_v31  ;;  %v1643_v37 = vadd.f32 %v1642_v36, %v1641_v33 }
 0x1a3   : > { %v2925_v38 = vadd.f32 %v1643_v37, %v1587_v35 }
 0x1c6   : > { %v1676_v39 = vpop.f32.mrb[16].mxu0 }
 0x1c7   : > { %v1677_v41 = vpop.f32.mrb[17].mxu0 }
 0x1c8   : > { %v1678_v42 = vadd.f32 %v1677_v41, %v1676_v39 }
 0x1c9   : > { %v1732_v46 = vpop.f32.mrb[16].mxu1 }
 0x1ca   : > { %v1209_v45 = vadd.f32 %v1678_v42, %v1104_v54  ;;  %v1679_v47 = vpop.f32.mrb[18].mxu0  ;;  %v1733_v48 = vpop.f32.mrb[17].mxu1 }
 0x1cb   : > { %v1680_v49 = vpop.f32.mrb[19].mxu0  ;;  %v1734_v50 = vadd.f32 %v1733_v48, %v1732_v46 }
 0x1cc   : > { %v1681_v52 = vadd.f32 %v1680_v49, %v1679_v47 }
 0x1cd   : > { %v1314_v53 = vadd.f32 %v1734_v50, %v1209_v45  ;;  %v1735_v56 = vpop.f32.mrb[18].mxu1 }
 0x1ce   : > { %v1214_v55 = vadd.f32 %v1681_v52, %v1109_v60  ;;  %v1682_v57 = vpop.f32.mrb[20].mxu0  ;;  %v1736_v58 = vpop.f32.mrb[19].mxu1 }
 0x1cf   : > { %v1683_v59 = vpop.f32.mrb[21].mxu0  ;;  %v1385_v61 = vmul.f32 %v2930_v51, %v1314_v53  ;;  %v1737_v54 = vadd.f32 %v1736_v58, %v1735_v56 }
 0x1d0   : > { %v1684_v62 = vadd.f32 %v1683_v59, %v1682_v57 }
 0x1d1   : > { %1393 = vst [vmem:[%s2933_s20] sm:$0xff] %v1385_v61  ;;  %v1319_v63 = vadd.f32 %v1737_v54, %v1214_v55  ;;  %v1738_v5 = vpop.f32.mrb[20].mxu1 }
 0x1d2   : > { %v1219_v1 = vadd.f32 %v1684_v62, %v2915_v3  ;;  %v1685_v0 = vpop.f32.mrb[22].mxu0  ;;  %v1739_v60 = vpop.f32.mrb[21].mxu1 }
 0x1d3   : > { %v1686_v2 = vpop.f32.mrb[23].mxu0  ;;  %v1386_v4 = vmul.f32 %v2930_v51, %v1319_v63  ;;  %v1740_v6 = vadd.f32 %v1739_v60, %v1738_v5 }
 0x1d4   : > { %v1687_v7 = vadd.f32 %v1686_v2, %v1685_v0 }
 0x1d5   : > { %1394 = vst [vmem:[%s2933_s20 + $0x8] sm:$0xff] %v1386_v4  ;;  %v1324_v8 = vadd.f32 %v1740_v6, %v1219_v1  ;;  %v1741_v10 = vpop.f32.mrb[22].mxu1 }
 0x1d6   : > { %v1224_v9 = vadd.f32 %v1687_v7, %v2917_v11  ;;  %v1688_v12 = vpop.f32.mrb[24].mxu0  ;;  %v1742_v19 = vpop.f32.mrb[23].mxu1 }
 0x1d7   : > { %v1689_v13 = vpop.f32.mrb[25].mxu0  ;;  %v1387_v3 = vmul.f32 %v2930_v51, %v1324_v8  ;;  %v1743_v14 = vadd.f32 %v1742_v19, %v1741_v10 }
 0x1d8   : > { %v1690_v15 = vadd.f32 %v1689_v13, %v1688_v12 }
 0x1d9   : > { %1395 = vst [vmem:[%s2933_s20 + $0x10] sm:$0xff] %v1387_v3  ;;  %v1329_v16 = vadd.f32 %v1743_v14, %v1224_v9  ;;  %v1744_v18 = vpop.f32.mrb[24].mxu1 }
 0x1da   : > { %v1229_v17 = vadd.f32 %v1690_v15, %v2919_v30  ;;  %v1691_v29 = vpop.f32.mrb[26].mxu0  ;;  %v1745_v20 = vpop.f32.mrb[25].mxu1 }
 0x1db   : > { %v1692_v21 = vpop.f32.mrb[27].mxu0  ;;  %v1388_v11 = vmul.f32 %v2930_v51, %v1329_v16  ;;  %v1746_v22 = vadd.f32 %v1745_v20, %v1744_v18 }
 0x1dc   : > { %v1693_v24 = vadd.f32 %v1692_v21, %v1691_v29 }
 0x1dd   : > { %1396 = vst [vmem:[%s2933_s20 + $0x18] sm:$0xff] %v1388_v11  ;;  %v1334_v25 = vadd.f32 %v1746_v22, %v1229_v17  ;;  %v1747_v27 = vpop.f32.mrb[26].mxu1 }
 0x1de   : > { %v1234_v26 = vadd.f32 %v1693_v24, %v2921_v23  ;;  %v1694_v28 = vpop.f32.mrb[28].mxu0  ;;  %v1748_v31 = vpop.f32.mrb[27].mxu1 }
 0x1df   : > { %v1695_v33 = vpop.f32.mrb[29].mxu0  ;;  %v1389_v30 = vmul.f32 %v2930_v51, %v1334_v25  ;;  %v1749_v34 = vadd.f32 %v1748_v31, %v1747_v27 }
 0x1e0   : > { %v1696_v35 = vadd.f32 %v1695_v33, %v1694_v28 }
 0x1e1   : > { %1397 = vst [vmem:[%s2933_s20 + $0x20] sm:$0xff] %v1389_v30  ;;  %v1339_v36 = vadd.f32 %v1749_v34, %v1234_v26  ;;  %v1750_v39 = vpop.f32.mrb[28].mxu1 }
 0x1e2   : > { %v1239_v37 = vadd.f32 %v1696_v35, %v2923_v32  ;;  %v1697_v40 = vpop.f32.mrb[30].mxu0  ;;  %v1751_v41 = vpop.f32.mrb[29].mxu1 }
 0x1e3   : > { %v1698_v23 = vpop.f32.mrb[31].mxu0  ;;  %v1390_v42 = vmul.f32 %v2930_v51, %v1339_v36  ;;  %v1752_v43 = vadd.f32 %v1751_v41, %v1750_v39 }
 0x1e4   : > { %v1699_v44 = vadd.f32 %v1698_v23, %v1697_v40 }
 0x1e5   : > { %1398 = vst [vmem:[%s2933_s20 + $0x28] sm:$0xff] %v1390_v42  ;;  %v1344_v45 = vadd.f32 %v1752_v43, %v1239_v37  ;;  %v1753_v47 = vpop.f32.mrb[30].mxu1 }
 0x1e6   : > { %v1244_v46 = vadd.f32 %v1699_v44, %v2925_v38  ;;  %v1754_v48 = vpop.f32.mrb[31].mxu1 }
 0x1e7   : > { %v1391_v32 = vmul.f32 %v2930_v51, %v1344_v45  ;;  %v1755_v49 = vadd.f32 %v1754_v48, %v1753_v47 }
 0x1e9   : > { %1399 = vst [vmem:[%s2933_s20 + $0x30] sm:$0xff] %v1391_v32  ;;  %v1349_v50 = vadd.f32 %v1755_v49, %v1244_v46 }
 0x1eb   : > { %v1392_v38 = vmul.f32 %v2930_v51, %v1349_v50 }
 0x1ed   : > { %1400 = vst [vmem:[%s2933_s20 + $0x38] sm:$0xff] %v1392_v38 }
 0x1ee   : > { %2035 = shalt.err (!%p2032_p7)
}
 0x1ef   : > { %s2036_s6 = scalar_lea.hbm %s2959_s29, 1024  ;;  %s2040_s24 = scalar_lea.hbm %s3014_s2, 2048 }
 0x1f0   : > { %p2037_p13 = scmp.ne.s32.totalorder %s2959_s29, %s2036_s6  ;;  %p2041_p12 = scmp.lt.u32.totalorder %s2959_s29, %s3014_s2 }
 0x1f1   : > { %p2042_p4 = scmp.lt.u32.totalorder %s2040_s24, %s2036_s6  ;;  %p2044_p5 = scmp.lt.u32.totalorder %s2036_s6, %s2959_s29 }
 0x1f2   : > { %p2038_p2 = pnand %p2037_p13, %p3035_p10 }
 0x1f3   : > { %p2043_p8 = por %p2042_p4, %p2041_p12 }
 0x1f4   : > { %p2039_p6 = pneg %p2038_p2 }
 0x1f5   : > { %p2045_p11 = por %p2044_p5, %p2043_p8 }
 0x1f7   : > { %p2046_p1 = pnand %p2045_p11, %p2039_p6 }
 0x1f9   : > { %2049 = shalt.err (!%p2046_p1)
}
 0x1fa   : > { %s2117_s18 = smov 128   ;;  %s2118_s20 = smov 8  }
 0x1fb   : > { %1890 = dma.vmem_to_hbm [thread:$0]  (%p3035_p10), %s2961_s26, 1024, %s2959_s29, %s1402_s5, %s2117_s18, %s2117_s18, %s2118_s20  }
 0x1fc PF: > { %s1430_s23 = sand.u32 1, %s2088_s9   ;;  %p3036_p0 = scmp.ne.s32.totalorder %s3025_s22, 0 }
 0x1fd   : > { %p3037_p9 = scmp.ge.s32.totalorder %s2108_s14, 2  ;;  %s1431_s7 = scalar_lea.sflag [#allocation5], %s1430_s23 }
 0x1ff   : > { %p1901_p3 = pnand %p3037_p9, %p3036_p0 }
 0x201   : > { %2083 = dma.done.wait (!%p1901_p3), %s1431_s7, 1024  }
 0x202   : > { %2085 = vsyncadd (!%p1901_p3), %s1431_s7, 4294966272  ;;  %s19_s14 = sadd.s32 1, %s2108_s14   ;;  %s3038_s9 = smov %s2092_s10 }
 0x203   : > { %p16_p7 = scmp.ge.s32.totalorder %s19_s14, 4   ;;  %s3039_s10 = smov %s2096_s11 }
 0x204   : > { %s3040_s11 = smov %s2253_s25  ;;  %s3041_s12 = smov %s2104_s13 }
 0x205   : > { %s3042_s13 = smov %s3044_s28  ;;  %18 = sbr.rel (!%p16_p7) target bundleno = 7 (0x7), region = 86 }
 0x20c   :  { %1436 = vsyncpa [#allocation4], 1 }
 0x20d   :  { %1438 = vsyncpa [#allocation4 + $0x1], 1 }
 0x20e   :  { %1439 = vsyncpa [#allocation7], 1 }
 0x20f   :  { %1441 = vsyncpa [#allocation7 + $0x1], 1 }
 0x210   :  { %1442 = vsyncpa [#allocation5], 1 }
 0x211   :  { %1444 = vsyncpa [#allocation5 + $0x1], 1 }

</bundles_post_ra>
